<compile_context>
chip_gen: v6e
topology: v6e:2x2x1
jax: 0.10.0
libtpu: 0.0.40
codegen_flags: <defaults>
</compile_context>

<pallas_src>
import math

import jax
import jax.numpy as jnp
from jax.experimental import pallas as pl
from jax.experimental.pallas import tpu as pltpu

# ----------------------------- config ---------------------------------------
VOCAB = 100
TYPE_VOCAB = 2
MAX_POS = 32
HIDDEN = 32
HEADS = 2
HEAD_DIM = HIDDEN // HEADS
INTER = 64
LAYERS = 2
LN_EPS = 1e-12
MASK_NEG = -10000.0  # HF BERT additive mask value

# lane-dense padded widths (multiples of 128)
H_PAD = 128
I_PAD = 128
INV_HIDDEN = 1.0 / HIDDEN
ATTN_SCALE = 1.0 / math.sqrt(HEAD_DIM)

ROW_TARGET = 256  # rows (Bt*S) per grid step; multiple of 256 feeds v6e/v7x MXU


# ----------------------------- fused kernel ----------------------------------
def _encoder_kernel(x_ref, mask_ref, eg_ref, eb_ref,
                    qkvw_ref, qkvb_ref, aow_ref, aob_ref,
                    ln1g_ref, ln1b_ref, iw_ref, ib_ref,
                    ow_ref, ob_ref, ln2g_ref, ln2b_ref,
                    o_ref):
    Bt, S, _ = x_ref.shape
    R = Bt * S
    layer = pl.program_id(1)

    # Hoisted lane mask selecting the real (un-padded) hidden lanes.
    lane = jax.lax.broadcasted_iota(jnp.int32, (1, H_PAD), 1)
    h_mask = (lane < HIDDEN).astype(jnp.float32)               # (1, H_PAD)

    def layernorm(x, g, b):
        # Stats over the real HIDDEN lanes only; zero-padded gamma/beta keep
        # padded output lanes at exactly 0.
        xm = x * h_mask
        mean = jnp.sum(xm, axis=-1, keepdims=True) * INV_HIDDEN
        d = (x - mean) * h_mask
        var = jnp.sum(d * d, axis=-1, keepdims=True) * INV_HIDDEN
        inv = jax.lax.rsqrt(var + LN_EPS)
        return (x - mean) * inv * g + b

    def matmul(a_f32, w_bf16):
        # bf16 operands into the MXU, f32 accumulation.
        return jnp.dot(a_f32.astype(jnp.bfloat16), w_bf16,
                       preferred_element_type=jnp.float32)

    # ---- first layer step: embedding LayerNorm seeds the VMEM-resident carry
    @pl.when(layer == 0)
    def _():
        x0 = x_ref[...].reshape(R, H_PAD)                      # f32
        o_ref[...] = layernorm(x0, eg_ref[...], eb_ref[...]).reshape(Bt, S, H_PAD)
        # dropout: eval-mode identity

    x = o_ref[...].reshape(R, H_PAD)                           # f32 carry
    mask_add = mask_ref[...]                                   # (Bt, 1, S)

    # ---- fused QKV projection over all Bt*S rows (one large MXU matmul) ----
    qkv = matmul(x, qkvw_ref[0]) + qkvb_ref[0]                 # (R, 3*H_PAD)
    q = qkv[:, 0:H_PAD].reshape(Bt, S, H_PAD)                  # scale pre-folded
    k = qkv[:, H_PAD:2 * H_PAD].reshape(Bt, S, H_PAD)
    v = qkv[:, 2 * H_PAD:3 * H_PAD].reshape(Bt, S, H_PAD)

    # ---- attention: batched per-head einsums, then ONE output projection ----
    ctx_parts = []
    for h in range(HEADS):                                     # tiny static loop
        lo = h * HEAD_DIM
        qh = q[..., lo:lo + HEAD_DIM]
        kh = k[..., lo:lo + HEAD_DIM]
        vh = v[..., lo:lo + HEAD_DIM]
        s = jnp.einsum('bqd,bkd->bqk', qh, kh,
                       preferred_element_type=jnp.float32)     # (Bt, S, S)
        s = s + mask_add
        s = s - jnp.max(s, axis=-1, keepdims=True)
        p = jnp.exp(s)
        p = p * pl.reciprocal(jnp.sum(p, axis=-1, keepdims=True), approx=True)
        ctx_parts.append(jnp.einsum('bqk,bkd->bqd', p, vh,
                                    preferred_element_type=jnp.float32))
    ctx_parts.append(jnp.zeros((Bt, S, H_PAD - HIDDEN), jnp.float32))
    ctx = jnp.concatenate(ctx_parts, axis=-1).reshape(R, H_PAD)  # lane-dense
    attn = matmul(ctx, aow_ref[0]) + aob_ref[0]                # single matmul

    # ---- residual + LayerNorm ----
    x = layernorm(attn + x, ln1g_ref[0], ln1b_ref[0])

    # ---- FFN: matmul + bias + exact GELU, matmul + bias, residual + LN ----
    inter = matmul(x, iw_ref[0]) + ib_ref[0]                   # (R, I_PAD)
    inter = 0.5 * inter * (1.0 + jax.lax.erf(inter * 0.7071067811865476))
    ffn = matmul(inter, ow_ref[0]) + ob_ref[0]                 # (R, H_PAD)
    x = layernorm(ffn + x, ln2g_ref[0], ln2b_ref[0])

    o_ref[...] = x.reshape(Bt, S, H_PAD).astype(o_ref.dtype)


def bert_encoder_pallas(x_emb_pad, mask3, packed, *, block_batches=None):
    B, S, _ = x_emb_pad.shape
    L = LAYERS

    if block_batches is None:
        block_batches = max(1, min(B, ROW_TARGET // S))
    while B % block_batches:
        block_batches -= 1
    Bt = block_batches
    n_row_blocks = B // Bt

    act_map = lambda r, l: (r, 0, 0)      # per row-block activations / mask / out
    w3_map = lambda r, l: (l, 0, 0)       # stream one layer's weights per step
    c2_map = lambda r, l: (0, 0)          # grid-constant embedding LN params

    grid_spec = pltpu.PrefetchScalarGridSpec(
        num_scalar_prefetch=0,
        grid=(n_row_blocks, L),
        in_specs=[
            pl.BlockSpec((Bt, S, H_PAD), act_map),          # embeddings
            pl.BlockSpec((Bt, 1, S), act_map),              # additive mask
            pl.BlockSpec((1, H_PAD), c2_map),               # emb LN gamma
            pl.BlockSpec((1, H_PAD), c2_map),               # emb LN beta
            pl.BlockSpec((1, H_PAD, 3 * H_PAD), w3_map),    # qkv_w (bf16)
            pl.BlockSpec((1, 1, 3 * H_PAD), w3_map),        # qkv_b
            pl.BlockSpec((1, H_PAD, H_PAD), w3_map),        # ao_w (bf16)
            pl.BlockSpec((1, 1, H_PAD), w3_map),            # ao_b
            pl.BlockSpec((1, 1, H_PAD), w3_map),            # ln1_g
            pl.BlockSpec((1, 1, H_PAD), w3_map),            # ln1_b
            pl.BlockSpec((1, H_PAD, I_PAD), w3_map),        # i_w (bf16)
            pl.BlockSpec((1, 1, I_PAD), w3_map),            # i_b
            pl.BlockSpec((1, I_PAD, H_PAD), w3_map),        # o_w (bf16)
            pl.BlockSpec((1, 1, H_PAD), w3_map),            # o_b
            pl.BlockSpec((1, 1, H_PAD), w3_map),            # ln2_g
            pl.BlockSpec((1, 1, H_PAD), w3_map),            # ln2_b
        ],
        # Output block index is constant along the layer axis: it stays
        # resident in VMEM and carries x across layer steps.
        out_specs=pl.BlockSpec((Bt, S, H_PAD), act_map),
    )
    return pl.pallas_call(
        _encoder_kernel,
        out_shape=jax.ShapeDtypeStruct((B, S, H_PAD), jnp.float32),
        grid_spec=grid_spec,
        compiler_params=pltpu.CompilerParams(
            dimension_semantics=("parallel", "arbitrary"),
            vmem_limit_bytes=32 * 1024 * 1024),
    )(x_emb_pad, mask3,
      packed["emb_ln_g"], packed["emb_ln_b"],
      packed["qkv_w"], packed["qkv_b"],
      packed["ao_w"], packed["ao_b"],
      packed["ln1_g"], packed["ln1_b"],
      packed["i_w"], packed["i_b"],
      packed["o_w"], packed["o_b"],
      packed["ln2_g"], packed["ln2_b"])


# ----------------------------- params ----------------------------------------
def init_params(key):
    def nrm(k, shape, scale=0.02):
        return scale * jax.random.normal(k, shape, dtype=jnp.float32)

    keys = jax.random.split(key, 4 + LAYERS)
    params = {
        "word_emb": nrm(keys[0], (VOCAB, HIDDEN)),
        "pos_emb": nrm(keys[1], (MAX_POS, HIDDEN)),
        "type_emb": nrm(keys[2], (TYPE_VOCAB, HIDDEN)),
        "emb_ln_g": jnp.ones((HIDDEN,), jnp.float32),
        "emb_ln_b": jnp.zeros((HIDDEN,), jnp.float32),
        "layers": [],
    }
    for li in range(LAYERS):
        lk = jax.random.split(keys[4 + li], 6)
        params["layers"].append({
            "q_w": nrm(lk[0], (HIDDEN, HIDDEN)),
            "q_b": jnp.zeros((HIDDEN,), jnp.float32),
            "k_w": nrm(lk[1], (HIDDEN, HIDDEN)),
            "k_b": jnp.zeros((HIDDEN,), jnp.float32),
            "v_w": nrm(lk[2], (HIDDEN, HIDDEN)),
            "v_b": jnp.zeros((HIDDEN,), jnp.float32),
            "ao_w": nrm(lk[3], (HIDDEN, HIDDEN)),
            "ao_b": jnp.zeros((HIDDEN,), jnp.float32),
            "ln1_g": jnp.ones((HIDDEN,), jnp.float32),
            "ln1_b": jnp.zeros((HIDDEN,), jnp.float32),
            "i_w": nrm(lk[4], (HIDDEN, INTER)),
            "i_b": jnp.zeros((INTER,), jnp.float32),
            "o_w": nrm(lk[5], (INTER, HIDDEN)),
            "o_b": jnp.zeros((HIDDEN,), jnp.float32),
            "ln2_g": jnp.ones((HIDDEN,), jnp.float32),
            "ln2_b": jnp.zeros((HIDDEN,), jnp.float32),
        })
    return params


def pack_params(params):
    """Zero-pad to lane-dense widths, fuse QKV (with 1/sqrt(dh) folded into Q),
    stack per-layer for streaming, bf16 weights."""
    def pad_mat(w, rows, cols):
        out = jnp.zeros((rows, cols), jnp.float32)
        return out.at[: w.shape[0], : w.shape[1]].set(w)

    def pad_row(v, cols):
        out = jnp.zeros((1, cols), jnp.float32)
        return out.at[0, : v.shape[0]].set(v)

    L = params["layers"]
    bf16 = jnp.bfloat16
    return {
        "emb_ln_g": pad_row(params["emb_ln_g"], H_PAD),
        "emb_ln_b": pad_row(params["emb_ln_b"], H_PAD),
        "qkv_w": jnp.stack([
            jnp.concatenate([pad_mat(lp["q_w"] * ATTN_SCALE, H_PAD, H_PAD),
                             pad_mat(lp["k_w"], H_PAD, H_PAD),
                             pad_mat(lp["v_w"], H_PAD, H_PAD)], axis=1)
            for lp in L]).astype(bf16),
        "qkv_b": jnp.stack([
            jnp.concatenate([pad_row(lp["q_b"] * ATTN_SCALE, H_PAD),
                             pad_row(lp["k_b"], H_PAD),
                             pad_row(lp["v_b"], H_PAD)], axis=1)
            for lp in L]),
        "ao_w": jnp.stack([pad_mat(lp["ao_w"], H_PAD, H_PAD) for lp in L]).astype(bf16),
        "ao_b": jnp.stack([pad_row(lp["ao_b"], H_PAD) for lp in L]),
        "ln1_g": jnp.stack([pad_row(lp["ln1_g"], H_PAD) for lp in L]),
        "ln1_b": jnp.stack([pad_row(lp["ln1_b"], H_PAD) for lp in L]),
        "i_w": jnp.stack([pad_mat(lp["i_w"], H_PAD, I_PAD) for lp in L]).astype(bf16),
        "i_b": jnp.stack([pad_row(lp["i_b"], I_PAD) for lp in L]),
        "o_w": jnp.stack([pad_mat(lp["o_w"], I_PAD, H_PAD) for lp in L]).astype(bf16),
        "o_b": jnp.stack([pad_row(lp["o_b"], H_PAD) for lp in L]),
        "ln2_g": jnp.stack([pad_row(lp["ln2_g"], H_PAD) for lp in L]),
        "ln2_b": jnp.stack([pad_row(lp["ln2_b"], H_PAD) for lp in L]),
    }


# ----------------------------- forward ----------------------------------------
def bert_encoder_forward(params, packed, input_ids, attention_mask,
                         *, block_batches=None):
    """Equivalent of BertEncoder.forward: returns last_hidden_state (B, S, H)."""
    B, S = input_ids.shape
    # --- embedding gathers are XLA glue; everything after runs in one kernel --
    we = params["word_emb"][input_ids]                         # (B, S, H)
    pe = params["pos_emb"][:S][None, :, :]                     # (1, S, H)
    te = params["type_emb"][jnp.zeros_like(input_ids)]         # token_type_ids=0
    x = we + pe + te
    x_pad = jnp.pad(x, ((0, 0), (0, 0), (0, H_PAD - HIDDEN)))  # lane-dense

    # additive attention mask: 0 where attended, -10000 where masked; (B, 1, S)
    mask3 = ((1.0 - attention_mask.astype(jnp.float32)) * MASK_NEG)[:, None, :]

    out = bert_encoder_pallas(x_pad, mask3, packed, block_batches=block_batches)
    return out[:, :, :HIDDEN]                                  # last hidden state


# ----------------------------- pure-JAX reference -----------------------------
def bert_encoder_reference(params, input_ids, attention_mask):
    B, S = input_ids.shape
    x = (params["word_emb"][input_ids] + params["pos_emb"][:S][None, :, :]
         + params["type_emb"][jnp.zeros_like(input_ids)])

    def ln(x, g, b):
        m = jnp.mean(x, axis=-1, keepdims=True)
        v = jnp.mean((x - m) ** 2, axis=-1, keepdims=True)
        return (x - m) * jax.lax.rsqrt(v + LN_EPS) * g + b

    x = ln(x, params["emb_ln_g"], params["emb_ln_b"])
    mask = ((1.0 - attention_mask.astype(jnp.float32)) * MASK_NEG)[:, None, None, :]
    for lp in params["layers"]:
        def split(t):
            return t.reshape(B, S, HEADS, HEAD_DIM).transpose(0, 2, 1, 3)
        qh = split(x @ lp["q_w"] + lp["q_b"])
        kh = split(x @ lp["k_w"] + lp["k_b"])
        vh = split(x @ lp["v_w"] + lp["v_b"])
        s = jnp.einsum('bhqd,bhkd->bhqk', qh, kh) * ATTN_SCALE + mask
        p = jax.nn.softmax(s, axis=-1)
        ctx = jnp.einsum('bhqk,bhkd->bhqd', p, vh)
        ctx = ctx.transpose(0, 2, 1, 3).reshape(B, S, HIDDEN)
        x = ln(ctx @ lp["ao_w"] + lp["ao_b"] + x, lp["ln1_g"], lp["ln1_b"])
        inter = x @ lp["i_w"] + lp["i_b"]
        inter = 0.5 * inter * (1.0 + jax.lax.erf(inter * 0.7071067811865476))
        x = ln(inter @ lp["o_w"] + lp["o_b"] + x, lp["ln2_g"], lp["ln2_b"])
    return x


# ----------------------------- main -------------------------------------------
if __name__ == "__main__":
    key = jax.random.PRNGKey(0)
    pkey, ikey = jax.random.split(key)
    params = init_params(pkey)
    packed = pack_params(params)

    B, S = 4, 8
    input_ids = jax.random.randint(ikey, (B, S), 0, VOCAB, dtype=jnp.int32)
    attention_mask = jnp.array(
        [[1, 1, 1, 1, 1, 1, 1, 1],
         [1, 1, 1, 1, 1, 1, 0, 0],
         [1, 1, 1, 1, 0, 0, 0, 0],
         [1, 1, 1, 1, 1, 1, 1, 1]], dtype=jnp.int32)

    # block_batches=2 -> grid (2 row-blocks, 2 layers): exercises the carry and
    # gives the v7x-parallel row axis extent 2; at real scale Bt*S targets 256.
    embeddings = bert_encoder_forward(params, packed, input_ids, attention_mask,
                                      block_batches=2)
    embeddings = jax.block_until_ready(embeddings)
    assert embeddings.shape == (B, S, HIDDEN)
    assert bool(jnp.all(jnp.isfinite(embeddings)))

    # Loose-tolerance check vs the f32 pure-JAX reference (bf16 weights and the
    # approx softmax reciprocal make exact matching impossible).
    ref = bert_encoder_reference(params, input_ids, attention_mask)
    max_err = float(jnp.max(jnp.abs(embeddings - ref)))
    assert max_err < 0.2, f"max abs error vs reference too large: {max_err}"

    print("KERNEL_OK")
</pallas_src>

<mosaic_0001>
module attributes {stable_mosaic.version = 11 : i64} {
  func.func @_encoder_kernel(%arg0: i32, %arg1: i32, %arg2: memref<2x8x128xf32, #tpu.memory_space<vmem>>, %arg3: memref<2x1x8xf32, #tpu.memory_space<vmem>>, %arg4: memref<1x128xf32, #tpu.memory_space<vmem>>, %arg5: memref<1x128xf32, #tpu.memory_space<vmem>>, %arg6: memref<1x128x384xbf16, #tpu.memory_space<vmem>>, %arg7: memref<1x1x384xf32, #tpu.memory_space<vmem>>, %arg8: memref<1x128x128xbf16, #tpu.memory_space<vmem>>, %arg9: memref<1x1x128xf32, #tpu.memory_space<vmem>>, %arg10: memref<1x1x128xf32, #tpu.memory_space<vmem>>, %arg11: memref<1x1x128xf32, #tpu.memory_space<vmem>>, %arg12: memref<1x128x128xbf16, #tpu.memory_space<vmem>>, %arg13: memref<1x1x128xf32, #tpu.memory_space<vmem>>, %arg14: memref<1x128x128xbf16, #tpu.memory_space<vmem>>, %arg15: memref<1x1x128xf32, #tpu.memory_space<vmem>>, %arg16: memref<1x1x128xf32, #tpu.memory_space<vmem>>, %arg17: memref<1x1x128xf32, #tpu.memory_space<vmem>>, %arg18: memref<2x8x128xf32, #tpu.memory_space<vmem>>) attributes {dimension_semantics = [#tpu.dimension_semantics<parallel>, #tpu.dimension_semantics<arbitrary>], iteration_bounds = array<i64: 2, 2>, scalar_prefetch = 0 : i64, scratch_operands = 0 : i64, tpu.core_type = #tpu.core_type<tc>, window_params = [{transform_indices = @transform_0, window_bounds = array<i64: 2, 8, 128>}, {transform_indices = @transform_1, window_bounds = array<i64: 2, 1, 8>}, {pipeline_mode = #tpu.pipeline_mode<synchronous>, transform_indices = @transform_2, window_bounds = array<i64: 1, 128>}, {pipeline_mode = #tpu.pipeline_mode<synchronous>, transform_indices = @transform_3, window_bounds = array<i64: 1, 128>}, {transform_indices = @transform_4, window_bounds = array<i64: 1, 128, 384>}, {transform_indices = @transform_5, window_bounds = array<i64: 1, 1, 384>}, {transform_indices = @transform_6, window_bounds = array<i64: 1, 128, 128>}, {transform_indices = @transform_7, window_bounds = array<i64: 1, 1, 128>}, {transform_indices = @transform_8, window_bounds = array<i64: 1, 1, 128>}, {transform_indices = @transform_9, window_bounds = array<i64: 1, 1, 128>}, {transform_indices = @transform_10, window_bounds = array<i64: 1, 128, 128>}, {transform_indices = @transform_11, window_bounds = array<i64: 1, 1, 128>}, {transform_indices = @transform_12, window_bounds = array<i64: 1, 128, 128>}, {transform_indices = @transform_13, window_bounds = array<i64: 1, 1, 128>}, {transform_indices = @transform_14, window_bounds = array<i64: 1, 1, 128>}, {transform_indices = @transform_15, window_bounds = array<i64: 1, 1, 128>}, {transform_indices = @transform_16, window_bounds = array<i64: 2, 8, 128>}]} {
    %0 = tpu.iota {dimensions = array<i32: 1>} : vector<1x128xi32>
    %c32_i32 = arith.constant 32 : i32
    %1 = vector.broadcast %c32_i32 : i32 to vector<1x128xi32>
    %2 = arith.cmpi slt, %0, %1 : vector<1x128xi32>
    %3 = arith.extui %2 : vector<1x128xi1> to vector<1x128xi32>
    %4 = arith.sitofp %3 : vector<1x128xi32> to vector<1x128xf32>
    %c0_i32 = arith.constant 0 : i32
    %5 = arith.cmpi eq, %arg1, %c0_i32 : i32
    %6 = arith.extui %5 : i1 to i32
    %c0_i32_0 = arith.constant 0 : i32
    %7 = arith.cmpi ne, %6, %c0_i32_0 : i32
    scf.if %7 {
      %c0_70 = arith.constant 0 : index
      %c0_71 = arith.constant 0 : index
      %c0_72 = arith.constant 0 : index
      %158 = vector.load %arg2[%c0_70, %c0_71, %c0_72] : memref<2x8x128xf32, #tpu.memory_space<vmem>>, vector<2x8x128xf32>
      %159 = vector.shape_cast %158 : vector<2x8x128xf32> to vector<16x128xf32>
      %c0_73 = arith.constant 0 : index
      %c0_74 = arith.constant 0 : index
      %160 = vector.load %arg4[%c0_73, %c0_74] : memref<1x128xf32, #tpu.memory_space<vmem>>, vector<1x128xf32>
      %c0_75 = arith.constant 0 : index
      %c0_76 = arith.constant 0 : index
      %161 = vector.load %arg5[%c0_75, %c0_76] : memref<1x128xf32, #tpu.memory_space<vmem>>, vector<1x128xf32>
      %162 = vector.broadcast %4 : vector<1x128xf32> to vector<16x128xf32>
      %163 = arith.mulf %159, %162 : vector<16x128xf32>
      %cst_77 = arith.constant dense<0.000000e+00> : vector<16xf32>
      %164 = vector.multi_reduction <add>, %163, %cst_77 [1] : vector<16x128xf32> to vector<16xf32>
      %165 = vector.shape_cast %164 : vector<16xf32> to vector<16x1xf32>
      %cst_78 = arith.constant 3.125000e-02 : f32
      %166 = vector.broadcast %cst_78 : f32 to vector<16x1xf32>
      %167 = arith.mulf %165, %166 : vector<16x1xf32>
      %168 = vector.broadcast %167 : vector<16x1xf32> to vector<16x128xf32>
      %169 = arith.subf %159, %168 : vector<16x128xf32>
      %170 = vector.broadcast %4 : vector<1x128xf32> to vector<16x128xf32>
      %171 = arith.mulf %169, %170 : vector<16x128xf32>
      %172 = arith.mulf %171, %171 : vector<16x128xf32>
      %cst_79 = arith.constant dense<0.000000e+00> : vector<16xf32>
      %173 = vector.multi_reduction <add>, %172, %cst_79 [1] : vector<16x128xf32> to vector<16xf32>
      %174 = vector.shape_cast %173 : vector<16xf32> to vector<16x1xf32>
      %cst_80 = arith.constant 3.125000e-02 : f32
      %175 = vector.broadcast %cst_80 : f32 to vector<16x1xf32>
      %176 = arith.mulf %174, %175 : vector<16x1xf32>
      %cst_81 = arith.constant 9.99999996E-13 : f32
      %177 = vector.broadcast %cst_81 : f32 to vector<16x1xf32>
      %178 = arith.addf %176, %177 : vector<16x1xf32>
      %179 = math.rsqrt %178 : vector<16x1xf32>
      %180 = vector.broadcast %167 : vector<16x1xf32> to vector<16x128xf32>
      %181 = arith.subf %159, %180 : vector<16x128xf32>
      %182 = vector.broadcast %179 : vector<16x1xf32> to vector<16x128xf32>
      %183 = arith.mulf %181, %182 : vector<16x128xf32>
      %184 = vector.broadcast %160 : vector<1x128xf32> to vector<16x128xf32>
      %185 = arith.mulf %183, %184 : vector<16x128xf32>
      %186 = vector.broadcast %161 : vector<1x128xf32> to vector<16x128xf32>
      %187 = arith.addf %185, %186 : vector<16x128xf32>
      %188 = vector.shape_cast %187 : vector<16x128xf32> to vector<2x8x128xf32>
      %c0_82 = arith.constant 0 : index
      %c0_83 = arith.constant 0 : index
      %c0_84 = arith.constant 0 : index
      %189 = vector.load %arg18[%c0_82, %c0_83, %c0_84] : memref<2x8x128xf32, #tpu.memory_space<vmem>>, vector<2x8x128xf32>
      tpu.vector_store %arg18[%c0_82, %c0_83, %c0_84], %188 {strides = array<i32>} : memref<2x8x128xf32, #tpu.memory_space<vmem>>, vector<2x8x128xf32>,
    } else {
    }
    %c0 = arith.constant 0 : index
    %c0_1 = arith.constant 0 : index
    %c0_2 = arith.constant 0 : index
    %8 = vector.load %arg18[%c0, %c0_1, %c0_2] : memref<2x8x128xf32, #tpu.memory_space<vmem>>, vector<2x8x128xf32>
    %9 = vector.shape_cast %8 : vector<2x8x128xf32> to vector<16x128xf32>
    %c0_3 = arith.constant 0 : index
    %c0_4 = arith.constant 0 : index
    %c0_5 = arith.constant 0 : index
    %10 = vector.load %arg3[%c0_3, %c0_4, %c0_5] : memref<2x1x8xf32, #tpu.memory_space<vmem>>, vector<2x1x8xf32>
    %c0_6 = arith.constant 0 : index
    %c0_7 = arith.constant 0 : index
    %c0_8 = arith.constant 0 : index
    %11 = vector.load %arg6[%c0_6, %c0_7, %c0_8] : memref<1x128x384xbf16, #tpu.memory_space<vmem>>, vector<1x128x384xbf16>
    %12 = vector.shape_cast %11 : vector<1x128x384xbf16> to vector<128x384xbf16>
    %13 = arith.truncf %9 : vector<16x128xf32> to vector<16x128xbf16>
    %cst = arith.constant dense<0.000000e+00> : vector<16x384xf32>
    %14 = tpu.matmul %13, %12, %cst {dimension_numbers = #tpu.dot_dimension_numbers<[1], [0], [0], [1], [0, 0, 1, 1], [], []>} : vector<16x128xbf16>, vector<128x384xbf16>, vector<16x384xf32> -> vector<16x384xf32>
    %c0_9 = arith.constant 0 : index
    %c0_10 = arith.constant 0 : index
    %c0_11 = arith.constant 0 : index
    %15 = vector.load %arg7[%c0_9, %c0_10, %c0_11] : memref<1x1x384xf32, #tpu.memory_space<vmem>>, vector<1x1x384xf32>
    %16 = vector.shape_cast %15 : vector<1x1x384xf32> to vector<1x384xf32>
    %17 = vector.broadcast %16 : vector<1x384xf32> to vector<16x384xf32>
    %18 = arith.addf %14, %17 : vector<16x384xf32>
    %19 = vector.extract_strided_slice %18 {offsets = [0, 0], sizes = [16, 128], strides = [1, 1]} : vector<16x384xf32> to vector<16x128xf32>
    %20 = vector.shape_cast %19 : vector<16x128xf32> to vector<2x8x128xf32>
    %21 = vector.extract_strided_slice %18 {offsets = [0, 128], sizes = [16, 128], strides = [1, 1]} : vector<16x384xf32> to vector<16x128xf32>
    %22 = vector.shape_cast %21 : vector<16x128xf32> to vector<2x8x128xf32>
    %23 = vector.extract_strided_slice %18 {offsets = [0, 256], sizes = [16, 128], strides = [1, 1]} : vector<16x384xf32> to vector<16x128xf32>
    %24 = vector.shape_cast %23 : vector<16x128xf32> to vector<2x8x128xf32>
    %25 = vector.extract_strided_slice %20 {offsets = [0, 0, 0], sizes = [2, 8, 16], strides = [1, 1, 1]} : vector<2x8x128xf32> to vector<2x8x16xf32>
    %26 = vector.extract_strided_slice %22 {offsets = [0, 0, 0], sizes = [2, 8, 16], strides = [1, 1, 1]} : vector<2x8x128xf32> to vector<2x8x16xf32>
    %27 = vector.extract_strided_slice %24 {offsets = [0, 0, 0], sizes = [2, 8, 16], strides = [1, 1, 1]} : vector<2x8x128xf32> to vector<2x8x16xf32>
    "tpu.trace_start"() <{level = 10 : i32, message = "bqd,bkd->bqk"}> : () -> ()
    %cst_12 = arith.constant dense<0.000000e+00> : vector<2x8x8xf32>
    %28 = tpu.matmul %25, %26, %cst_12 {dimension_numbers = #tpu.dot_dimension_numbers<[2], [2], [1], [1], [0, 0, 0, 1, 1, 1], [0], [0]>} : vector<2x8x16xf32>, vector<2x8x16xf32>, vector<2x8x8xf32> -> vector<2x8x8xf32>
    "tpu.trace_stop"() : () -> ()
    %29 = vector.broadcast %10 : vector<2x1x8xf32> to vector<2x8x8xf32>
    %30 = arith.addf %28, %29 : vector<2x8x8xf32>
    %cst_13 = arith.constant dense<0xFF800000> : vector<2x8xf32>
    %31 = vector.multi_reduction <maximumf>, %30, %cst_13 [2] : vector<2x8x8xf32> to vector<2x8xf32>
    %32 = vector.shape_cast %31 : vector<2x8xf32> to vector<2x8x1xf32>
    %33 = vector.broadcast %32 : vector<2x8x1xf32> to vector<2x8x8xf32>
    %34 = arith.subf %30, %33 : vector<2x8x8xf32>
    %35 = math.exp %34 : vector<2x8x8xf32>
    %cst_14 = arith.constant dense<0.000000e+00> : vector<2x8xf32>
    %36 = vector.multi_reduction <add>, %35, %cst_14 [2] : vector<2x8x8xf32> to vector<2x8xf32>
    %37 = vector.shape_cast %36 : vector<2x8xf32> to vector<2x8x1xf32>
    %38 = tpu.reciprocal %37 {approx = true} : vector<2x8x1xf32> -> vector<2x8x1xf32>
    %39 = vector.broadcast %38 : vector<2x8x1xf32> to vector<2x8x8xf32>
    %40 = arith.mulf %35, %39 : vector<2x8x8xf32>
    "tpu.trace_start"() <{level = 10 : i32, message = "bqk,bkd->bqd"}> : () -> ()
    %cst_15 = arith.constant dense<0.000000e+00> : vector<2x8x16xf32>
    %41 = tpu.matmul %40, %27, %cst_15 {dimension_numbers = #tpu.dot_dimension_numbers<[2], [1], [1], [2], [0, 0, 0, 1, 1, 2], [0], [0]>} : vector<2x8x8xf32>, vector<2x8x16xf32>, vector<2x8x16xf32> -> vector<2x8x16xf32>
    "tpu.trace_stop"() : () -> ()
    %42 = vector.extract_strided_slice %20 {offsets = [0, 0, 16], sizes = [2, 8, 16], strides = [1, 1, 1]} : vector<2x8x128xf32> to vector<2x8x16xf32>
    %43 = vector.extract_strided_slice %22 {offsets = [0, 0, 16], sizes = [2, 8, 16], strides = [1, 1, 1]} : vector<2x8x128xf32> to vector<2x8x16xf32>
    %44 = vector.extract_strided_slice %24 {offsets = [0, 0, 16], sizes = [2, 8, 16], strides = [1, 1, 1]} : vector<2x8x128xf32> to vector<2x8x16xf32>
    "tpu.trace_start"() <{level = 10 : i32, message = "bqd,bkd->bqk"}> : () -> ()
    %cst_16 = arith.constant dense<0.000000e+00> : vector<2x8x8xf32>
    %45 = tpu.matmul %42, %43, %cst_16 {dimension_numbers = #tpu.dot_dimension_numbers<[2], [2], [1], [1], [0, 0, 0, 1, 1, 1], [0], [0]>} : vector<2x8x16xf32>, vector<2x8x16xf32>, vector<2x8x8xf32> -> vector<2x8x8xf32>
    "tpu.trace_stop"() : () -> ()
    %46 = vector.broadcast %10 : vector<2x1x8xf32> to vector<2x8x8xf32>
    %47 = arith.addf %45, %46 : vector<2x8x8xf32>
    %cst_17 = arith.constant dense<0xFF800000> : vector<2x8xf32>
    %48 = vector.multi_reduction <maximumf>, %47, %cst_17 [2] : vector<2x8x8xf32> to vector<2x8xf32>
    %49 = vector.shape_cast %48 : vector<2x8xf32> to vector<2x8x1xf32>
    %50 = vector.broadcast %49 : vector<2x8x1xf32> to vector<2x8x8xf32>
    %51 = arith.subf %47, %50 : vector<2x8x8xf32>
    %52 = math.exp %51 : vector<2x8x8xf32>
    %cst_18 = arith.constant dense<0.000000e+00> : vector<2x8xf32>
    %53 = vector.multi_reduction <add>, %52, %cst_18 [2] : vector<2x8x8xf32> to vector<2x8xf32>
    %54 = vector.shape_cast %53 : vector<2x8xf32> to vector<2x8x1xf32>
    %55 = tpu.reciprocal %54 {approx = true} : vector<2x8x1xf32> -> vector<2x8x1xf32>
    %56 = vector.broadcast %55 : vector<2x8x1xf32> to vector<2x8x8xf32>
    %57 = arith.mulf %52, %56 : vector<2x8x8xf32>
    "tpu.trace_start"() <{level = 10 : i32, message = "bqk,bkd->bqd"}> : () -> ()
    %cst_19 = arith.constant dense<0.000000e+00> : vector<2x8x16xf32>
    %58 = tpu.matmul %57, %44, %cst_19 {dimension_numbers = #tpu.dot_dimension_numbers<[2], [1], [1], [2], [0, 0, 0, 1, 1, 2], [0], [0]>} : vector<2x8x8xf32>, vector<2x8x16xf32>, vector<2x8x16xf32> -> vector<2x8x16xf32>
    %cst_20 = arith.constant 0.000000e+00 : f32
    "tpu.trace_stop"() : () -> ()
    %59 = vector.broadcast %cst_20 : f32 to vector<2x8x96xf32>
    %60 = tpu.concatenate %41, %58, %59 in 2 : vector<2x8x16xf32>, vector<2x8x16xf32>, vector<2x8x96xf32> -> vector<2x8x128xf32>
    %61 = vector.shape_cast %60 : vector<2x8x128xf32> to vector<16x128xf32>
    %c0_21 = arith.constant 0 : index
    %c0_22 = arith.constant 0 : index
    %c0_23 = arith.constant 0 : index
    %62 = vector.load %arg8[%c0_21, %c0_22, %c0_23] : memref<1x128x128xbf16, #tpu.memory_space<vmem>>, vector<1x128x128xbf16>
    %63 = vector.shape_cast %62 : vector<1x128x128xbf16> to vector<128x128xbf16>
    %64 = arith.truncf %61 : vector<16x128xf32> to vector<16x128xbf16>
    %cst_24 = arith.constant dense<0.000000e+00> : vector<16x128xf32>
    %65 = tpu.matmul %64, %63, %cst_24 {dimension_numbers = #tpu.dot_dimension_numbers<[1], [0], [0], [1], [0, 0, 1, 1], [], []>} : vector<16x128xbf16>, vector<128x128xbf16>, vector<16x128xf32> -> vector<16x128xf32>
    %c0_25 = arith.constant 0 : index
    %c0_26 = arith.constant 0 : index
    %c0_27 = arith.constant 0 : index
    %66 = vector.load %arg9[%c0_25, %c0_26, %c0_27] : memref<1x1x128xf32, #tpu.memory_space<vmem>>, vector<1x1x128xf32>
    %67 = vector.shape_cast %66 : vector<1x1x128xf32> to vector<1x128xf32>
    %68 = vector.broadcast %67 : vector<1x128xf32> to vector<16x128xf32>
    %69 = arith.addf %65, %68 : vector<16x128xf32>
    %70 = arith.addf %69, %9 : vector<16x128xf32>
    %c0_28 = arith.constant 0 : index
    %c0_29 = arith.constant 0 : index
    %c0_30 = arith.constant 0 : index
    %71 = vector.load %arg10[%c0_28, %c0_29, %c0_30] : memref<1x1x128xf32, #tpu.memory_space<vmem>>, vector<1x1x128xf32>
    %72 = vector.shape_cast %71 : vector<1x1x128xf32> to vector<1x128xf32>
    %c0_31 = arith.constant 0 : index
    %c0_32 = arith.constant 0 : index
    %c0_33 = arith.constant 0 : index
    %73 = vector.load %arg11[%c0_31, %c0_32, %c0_33] : memref<1x1x128xf32, #tpu.memory_space<vmem>>, vector<1x1x128xf32>
    %74 = vector.shape_cast %73 : vector<1x1x128xf32> to vector<1x128xf32>
    %75 = vector.broadcast %4 : vector<1x128xf32> to vector<16x128xf32>
    %76 = arith.mulf %70, %75 : vector<16x128xf32>
    %cst_34 = arith.constant dense<0.000000e+00> : vector<16xf32>
    %77 = vector.multi_reduction <add>, %76, %cst_34 [1] : vector<16x128xf32> to vector<16xf32>
    %78 = vector.shape_cast %77 : vector<16xf32> to vector<16x1xf32>
    %cst_35 = arith.constant 3.125000e-02 : f32
    %79 = vector.broadcast %cst_35 : f32 to vector<16x1xf32>
    %80 = arith.mulf %78, %79 : vector<16x1xf32>
    %81 = vector.broadcast %80 : vector<16x1xf32> to vector<16x128xf32>
    %82 = arith.subf %70, %81 : vector<16x128xf32>
    %83 = vector.broadcast %4 : vector<1x128xf32> to vector<16x128xf32>
    %84 = arith.mulf %82, %83 : vector<16x128xf32>
    %85 = arith.mulf %84, %84 : vector<16x128xf32>
    %cst_36 = arith.constant dense<0.000000e+00> : vector<16xf32>
    %86 = vector.multi_reduction <add>, %85, %cst_36 [1] : vector<16x128xf32> to vector<16xf32>
    %87 = vector.shape_cast %86 : vector<16xf32> to vector<16x1xf32>
    %cst_37 = arith.constant 3.125000e-02 : f32
    %88 = vector.broadcast %cst_37 : f32 to vector<16x1xf32>
    %89 = arith.mulf %87, %88 : vector<16x1xf32>
    %cst_38 = arith.constant 9.99999996E-13 : f32
    %90 = vector.broadcast %cst_38 : f32 to vector<16x1xf32>
    %91 = arith.addf %89, %90 : vector<16x1xf32>
    %92 = math.rsqrt %91 : vector<16x1xf32>
    %93 = vector.broadcast %80 : vector<16x1xf32> to vector<16x128xf32>
    %94 = arith.subf %70, %93 : vector<16x128xf32>
    %95 = vector.broadcast %92 : vector<16x1xf32> to vector<16x128xf32>
    %96 = arith.mulf %94, %95 : vector<16x128xf32>
    %97 = vector.broadcast %72 : vector<1x128xf32> to vector<16x128xf32>
    %98 = arith.mulf %96, %97 : vector<16x128xf32>
    %99 = vector.broadcast %74 : vector<1x128xf32> to vector<16x128xf32>
    %100 = arith.addf %98, %99 : vector<16x128xf32>
    %c0_39 = arith.constant 0 : index
    %c0_40 = arith.constant 0 : index
    %c0_41 = arith.constant 0 : index
    %101 = vector.load %arg12[%c0_39, %c0_40, %c0_41] : memref<1x128x128xbf16, #tpu.memory_space<vmem>>, vector<1x128x128xbf16>
    %102 = vector.shape_cast %101 : vector<1x128x128xbf16> to vector<128x128xbf16>
    %103 = arith.truncf %100 : vector<16x128xf32> to vector<16x128xbf16>
    %cst_42 = arith.constant dense<0.000000e+00> : vector<16x128xf32>
    %104 = tpu.matmul %103, %102, %cst_42 {dimension_numbers = #tpu.dot_dimension_numbers<[1], [0], [0], [1], [0, 0, 1, 1], [], []>} : vector<16x128xbf16>, vector<128x128xbf16>, vector<16x128xf32> -> vector<16x128xf32>
    %c0_43 = arith.constant 0 : index
    %c0_44 = arith.constant 0 : index
    %c0_45 = arith.constant 0 : index
    %105 = vector.load %arg13[%c0_43, %c0_44, %c0_45] : memref<1x1x128xf32, #tpu.memory_space<vmem>>, vector<1x1x128xf32>
    %106 = vector.shape_cast %105 : vector<1x1x128xf32> to vector<1x128xf32>
    %107 = vector.broadcast %106 : vector<1x128xf32> to vector<16x128xf32>
    %108 = arith.addf %104, %107 : vector<16x128xf32>
    %cst_46 = arith.constant 5.000000e-01 : f32
    %109 = vector.broadcast %cst_46 : f32 to vector<16x128xf32>
    %110 = arith.mulf %109, %108 : vector<16x128xf32>
    %cst_47 = arith.constant 0.707106769 : f32
    %111 = vector.broadcast %cst_47 : f32 to vector<16x128xf32>
    %112 = arith.mulf %108, %111 : vector<16x128xf32>
    %113 = math.erf %112 : vector<16x128xf32>
    %cst_48 = arith.constant 1.000000e+00 : f32
    %114 = vector.broadcast %cst_48 : f32 to vector<16x128xf32>
    %115 = arith.addf %114, %113 : vector<16x128xf32>
    %116 = arith.mulf %110, %115 : vector<16x128xf32>
    %c0_49 = arith.constant 0 : index
    %c0_50 = arith.constant 0 : index
    %c0_51 = arith.constant 0 : index
    %117 = vector.load %arg14[%c0_49, %c0_50, %c0_51] : memref<1x128x128xbf16, #tpu.memory_space<vmem>>, vector<1x128x128xbf16>
    %118 = vector.shape_cast %117 : vector<1x128x128xbf16> to vector<128x128xbf16>
    %119 = arith.truncf %116 : vector<16x128xf32> to vector<16x128xbf16>
    %cst_52 = arith.constant dense<0.000000e+00> : vector<16x128xf32>
    %120 = tpu.matmul %119, %118, %cst_52 {dimension_numbers = #tpu.dot_dimension_numbers<[1], [0], [0], [1], [0, 0, 1, 1], [], []>} : vector<16x128xbf16>, vector<128x128xbf16>, vector<16x128xf32> -> vector<16x128xf32>
    %c0_53 = arith.constant 0 : index
    %c0_54 = arith.constant 0 : index
    %c0_55 = arith.constant 0 : index
    %121 = vector.load %arg15[%c0_53, %c0_54, %c0_55] : memref<1x1x128xf32, #tpu.memory_space<vmem>>, vector<1x1x128xf32>
    %122 = vector.shape_cast %121 : vector<1x1x128xf32> to vector<1x128xf32>
    %123 = vector.broadcast %122 : vector<1x128xf32> to vector<16x128xf32>
    %124 = arith.addf %120, %123 : vector<16x128xf32>
    %125 = arith.addf %124, %100 : vector<16x128xf32>
    %c0_56 = arith.constant 0 : index
    %c0_57 = arith.constant 0 : index
    %c0_58 = arith.constant 0 : index
    %126 = vector.load %arg16[%c0_56, %c0_57, %c0_58] : memref<1x1x128xf32, #tpu.memory_space<vmem>>, vector<1x1x128xf32>
    %127 = vector.shape_cast %126 : vector<1x1x128xf32> to vector<1x128xf32>
    %c0_59 = arith.constant 0 : index
    %c0_60 = arith.constant 0 : index
    %c0_61 = arith.constant 0 : index
    %128 = vector.load %arg17[%c0_59, %c0_60, %c0_61] : memref<1x1x128xf32, #tpu.memory_space<vmem>>, vector<1x1x128xf32>
    %129 = vector.shape_cast %128 : vector<1x1x128xf32> to vector<1x128xf32>
    %130 = vector.broadcast %4 : vector<1x128xf32> to vector<16x128xf32>
    %131 = arith.mulf %125, %130 : vector<16x128xf32>
    %cst_62 = arith.constant dense<0.000000e+00> : vector<16xf32>
    %132 = vector.multi_reduction <add>, %131, %cst_62 [1] : vector<16x128xf32> to vector<16xf32>
    %133 = vector.shape_cast %132 : vector<16xf32> to vector<16x1xf32>
    %cst_63 = arith.constant 3.125000e-02 : f32
    %134 = vector.broadcast %cst_63 : f32 to vector<16x1xf32>
    %135 = arith.mulf %133, %134 : vector<16x1xf32>
    %136 = vector.broadcast %135 : vector<16x1xf32> to vector<16x128xf32>
    %137 = arith.subf %125, %136 : vector<16x128xf32>
    %138 = vector.broadcast %4 : vector<1x128xf32> to vector<16x128xf32>
    %139 = arith.mulf %137, %138 : vector<16x128xf32>
    %140 = arith.mulf %139, %139 : vector<16x128xf32>
    %cst_64 = arith.constant dense<0.000000e+00> : vector<16xf32>
    %141 = vector.multi_reduction <add>, %140, %cst_64 [1] : vector<16x128xf32> to vector<16xf32>
    %142 = vector.shape_cast %141 : vector<16xf32> to vector<16x1xf32>
    %cst_65 = arith.constant 3.125000e-02 : f32
    %143 = vector.broadcast %cst_65 : f32 to vector<16x1xf32>
    %144 = arith.mulf %142, %143 : vector<16x1xf32>
    %cst_66 = arith.constant 9.99999996E-13 : f32
    %145 = vector.broadcast %cst_66 : f32 to vector<16x1xf32>
    %146 = arith.addf %144, %145 : vector<16x1xf32>
    %147 = math.rsqrt %146 : vector<16x1xf32>
    %148 = vector.broadcast %135 : vector<16x1xf32> to vector<16x128xf32>
    %149 = arith.subf %125, %148 : vector<16x128xf32>
    %150 = vector.broadcast %147 : vector<16x1xf32> to vector<16x128xf32>
    %151 = arith.mulf %149, %150 : vector<16x128xf32>
    %152 = vector.broadcast %127 : vector<1x128xf32> to vector<16x128xf32>
    %153 = arith.mulf %151, %152 : vector<16x128xf32>
    %154 = vector.broadcast %129 : vector<1x128xf32> to vector<16x128xf32>
    %155 = arith.addf %153, %154 : vector<16x128xf32>
    %156 = vector.shape_cast %155 : vector<16x128xf32> to vector<2x8x128xf32>
    %c0_67 = arith.constant 0 : index
    %c0_68 = arith.constant 0 : index
    %c0_69 = arith.constant 0 : index
    %157 = vector.load %arg18[%c0_67, %c0_68, %c0_69] : memref<2x8x128xf32, #tpu.memory_space<vmem>>, vector<2x8x128xf32>
    tpu.vector_store %arg18[%c0_67, %c0_68, %c0_69], %156 {strides = array<i32>} : memref<2x8x128xf32, #tpu.memory_space<vmem>>, vector<2x8x128xf32>,
    return
  }
  func.func @transform_0(%arg0: i32, %arg1: i32) -> (i32, i32, i32) {
    %c0_i32 = arith.constant 0 : i32
    %c0_i32_0 = arith.constant 0 : i32
    %c0_i32_1 = arith.constant 0 : i32
    return %arg0, %c0_i32, %c0_i32_0 : i32, i32, i32
  }
  func.func @transform_1(%arg0: i32, %arg1: i32) -> (i32, i32, i32) {
    %c0_i32 = arith.constant 0 : i32
    %c0_i32_0 = arith.constant 0 : i32
    %c0_i32_1 = arith.constant 0 : i32
    return %arg0, %c0_i32, %c0_i32_0 : i32, i32, i32
  }
  func.func @transform_2(%arg0: i32, %arg1: i32) -> (i32, i32) {
    %c0_i32 = arith.constant 0 : i32
    %c0_i32_0 = arith.constant 0 : i32
    %c0_i32_1 = arith.constant 0 : i32
    return %c0_i32, %c0_i32_0 : i32, i32
  }
  func.func @transform_3(%arg0: i32, %arg1: i32) -> (i32, i32) {
    %c0_i32 = arith.constant 0 : i32
    %c0_i32_0 = arith.constant 0 : i32
    %c0_i32_1 = arith.constant 0 : i32
    return %c0_i32, %c0_i32_0 : i32, i32
  }
  func.func @transform_4(%arg0: i32, %arg1: i32) -> (i32, i32, i32) {
    %c0_i32 = arith.constant 0 : i32
    %c0_i32_0 = arith.constant 0 : i32
    %c0_i32_1 = arith.constant 0 : i32
    return %arg1, %c0_i32, %c0_i32_0 : i32, i32, i32
  }
  func.func @transform_5(%arg0: i32, %arg1: i32) -> (i32, i32, i32) {
    %c0_i32 = arith.constant 0 : i32
    %c0_i32_0 = arith.constant 0 : i32
    %c0_i32_1 = arith.constant 0 : i32
    return %arg1, %c0_i32, %c0_i32_0 : i32, i32, i32
  }
  func.func @transform_6(%arg0: i32, %arg1: i32) -> (i32, i32, i32) {
    %c0_i32 = arith.constant 0 : i32
    %c0_i32_0 = arith.constant 0 : i32
    %c0_i32_1 = arith.constant 0 : i32
    return %arg1, %c0_i32, %c0_i32_0 : i32, i32, i32
  }
  func.func @transform_7(%arg0: i32, %arg1: i32) -> (i32, i32, i32) {
    %c0_i32 = arith.constant 0 : i32
    %c0_i32_0 = arith.constant 0 : i32
    %c0_i32_1 = arith.constant 0 : i32
    return %arg1, %c0_i32, %c0_i32_0 : i32, i32, i32
  }
  func.func @transform_8(%arg0: i32, %arg1: i32) -> (i32, i32, i32) {
    %c0_i32 = arith.constant 0 : i32
    %c0_i32_0 = arith.constant 0 : i32
    %c0_i32_1 = arith.constant 0 : i32
    return %arg1, %c0_i32, %c0_i32_0 : i32, i32, i32
  }
  func.func @transform_9(%arg0: i32, %arg1: i32) -> (i32, i32, i32) {
    %c0_i32 = arith.constant 0 : i32
    %c0_i32_0 = arith.constant 0 : i32
    %c0_i32_1 = arith.constant 0 : i32
    return %arg1, %c0_i32, %c0_i32_0 : i32, i32, i32
  }
  func.func @transform_10(%arg0: i32, %arg1: i32) -> (i32, i32, i32) {
    %c0_i32 = arith.constant 0 : i32
    %c0_i32_0 = arith.constant 0 : i32
    %c0_i32_1 = arith.constant 0 : i32
    return %arg1, %c0_i32, %c0_i32_0 : i32, i32, i32
  }
  func.func @transform_11(%arg0: i32, %arg1: i32) -> (i32, i32, i32) {
    %c0_i32 = arith.constant 0 : i32
    %c0_i32_0 = arith.constant 0 : i32
    %c0_i32_1 = arith.constant 0 : i32
    return %arg1, %c0_i32, %c0_i32_0 : i32, i32, i32
  }
  func.func @transform_12(%arg0: i32, %arg1: i32) -> (i32, i32, i32) {
    %c0_i32 = arith.constant 0 : i32
    %c0_i32_0 = arith.constant 0 : i32
    %c0_i32_1 = arith.constant 0 : i32
    return %arg1, %c0_i32, %c0_i32_0 : i32, i32, i32
  }
  func.func @transform_13(%arg0: i32, %arg1: i32) -> (i32, i32, i32) {
    %c0_i32 = arith.constant 0 : i32
    %c0_i32_0 = arith.constant 0 : i32
    %c0_i32_1 = arith.constant 0 : i32
    return %arg1, %c0_i32, %c0_i32_0 : i32, i32, i32
  }
  func.func @transform_14(%arg0: i32, %arg1: i32) -> (i32, i32, i32) {
    %c0_i32 = arith.constant 0 : i32
    %c0_i32_0 = arith.constant 0 : i32
    %c0_i32_1 = arith.constant 0 : i32
    return %arg1, %c0_i32, %c0_i32_0 : i32, i32, i32
  }
  func.func @transform_15(%arg0: i32, %arg1: i32) -> (i32, i32, i32) {
    %c0_i32 = arith.constant 0 : i32
    %c0_i32_0 = arith.constant 0 : i32
    %c0_i32_1 = arith.constant 0 : i32
    return %arg1, %c0_i32, %c0_i32_0 : i32, i32, i32
  }
  func.func @transform_16(%arg0: i32, %arg1: i32) -> (i32, i32, i32) {
    %c0_i32 = arith.constant 0 : i32
    %c0_i32_0 = arith.constant 0 : i32
    %c0_i32_1 = arith.constant 0 : i32
    return %arg0, %c0_i32, %c0_i32_0 : i32, i32, i32
  }
}

</mosaic_0001>

<bundles_post_ra>
// kernel: tpu_custom_call.1
= control target key start
LH: loop header
LB: loop body
LE: loop exit
PB: predicated region body
PF: predicated region fallthrough
CT: control target
= control target key end

     0   :  { %s4335_s0 = inlined_call_operand.hbm [shape: f32[4,8,128], index: 0, kind: input, shape index: {}]   ;;  %s4336_s1 = inlined_call_operand.hbm [shape: f32[4,1,8], index: 1, kind: input, shape index: {}]   ;;  %s4337_s2 = inlined_call_operand.hbm [shape: f32[1,128], index: 2, kind: input, shape index: {}]   ;;  %s4338_s3 = inlined_call_operand.hbm [shape: f32[1,128], index: 3, kind: input, shape index: {}]   ;;  %s4339_s4 = inlined_call_operand.hbm [shape: bf16[2,128,384], index: 4, kind: input, shape index: {}]   ;;  %s4340_s5 = inlined_call_operand.vmem [shape: f32[2,1,384], index: 5, kind: input, shape index: {}]   ;;  %s4341_s6 = inlined_call_operand.hbm [shape: bf16[2,128,128], index: 6, kind: input, shape index: {}]   ;;  %s4342_s7 = inlined_call_operand.vmem [shape: f32[2,1,128], index: 7, kind: input, shape index: {}]   ;;  %s4343_s8 = inlined_call_operand.vmem [shape: f32[2,1,128], index: 8, kind: input, shape index: {}]   ;;  %s4344_s9 = inlined_call_operand.vmem [shape: f32[2,1,128], index: 9, kind: input, shape index: {}]   ;;  %s4345_s10 = inlined_call_operand.hbm [shape: bf16[2,128,128], index: 10, kind: input, shape index: {}]   ;;  %s4346_s11 = inlined_call_operand.vmem [shape: f32[2,1,128], index: 11, kind: input, shape index: {}]   ;;  %s4347_s12 = inlined_call_operand.hbm [shape: bf16[2,128,128], index: 12, kind: input, shape index: {}]   ;;  %s4348_s13 = inlined_call_operand.vmem [shape: f32[2,1,128], index: 13, kind: input, shape index: {}]   ;;  %s4349_s14 = inlined_call_operand.vmem [shape: f32[2,1,128], index: 14, kind: input, shape index: {}]   ;;  %s4350_s15 = inlined_call_operand.vmem [shape: f32[2,1,128], index: 15, kind: input, shape index: {}]   ;;  %s4351_s16 = inlined_call_operand.hbm [shape: f32[4,8,128], index: 16, kind: output, shape index: {}]  }
   0x1   :  { %4382 = sst [smem:[#allocation43_spill]] %s4335_s0 }
   0x2   :  { %4383 = sst [smem:[#allocation44_spill]] %s4336_s1 }
   0x3   :  { %4384 = sst [smem:[#allocation45_spill]] %s4337_s2 }
   0x4   :  { %4385 = sst [smem:[#allocation46_spill]] %s4338_s3 }
   0x5   :  { %4386 = sst [smem:[#allocation47_spill]] %s4339_s4 }
   0x6   :  { %4387 = sst [smem:[#allocation48_spill]] %s4340_s5 }
   0x7   :  { %4388 = sst [smem:[#allocation49_spill]] %s4341_s6 }
   0x8   :  { %4389 = sst [smem:[#allocation50_spill]] %s4342_s7 }
   0x9   :  { %4390 = sst [smem:[#allocation51_spill]] %s4343_s8 }
   0xa   :  { %4391 = sst [smem:[#allocation52_spill]] %s4344_s9 }
   0xb   :  { %4392 = sst [smem:[#allocation53_spill]] %s4345_s10 }
   0xc   :  { %4393 = sst [smem:[#allocation54_spill]] %s4346_s11 }
   0xd   :  { %4394 = sst [smem:[#allocation55_spill]] %s4347_s12 }
   0xe   :  { %4395 = sst [smem:[#allocation56_spill]] %s4348_s13 }
   0xf   :  { %4396 = sst [smem:[#allocation57_spill]] %s4349_s14 }
  0x10   :  { %4397 = sst [smem:[#allocation58_spill]] %s4350_s15 }
  0x11   :  { %4398 = sst [smem:[#allocation59_spill]] %s4351_s16 }
  0x12   :  { %21 = vsyncpa [#allocation3], 0 }
  0x13   :  { %23 = vsyncpa [#allocation3 + $0x1], 0 }
  0x14   :  { %24 = vsyncpa [#allocation6], 0 }
  0x15   :  { %26 = vsyncpa [#allocation6 + $0x1], 0 }
  0x16   :  { %27 = vsyncpa [#allocation9], 0 }
  0x17   :  { %28 = vsyncpa [#allocation4], 0 }
  0x18   :  { %30 = vsyncpa [#allocation4 + $0x1], 0  ;;  %s3653_s21 = smov 0   ;;  %s3655_s22 = smov 0  }
  0x19   :  { %s3657_s23 = smov 0   ;;  %s3659_s24 = smov 0  }
  0x1a   :  { %s3661_s25 = smov 0   ;;  %s3663_s26 = smov 0  }
  0x1b   :  { %s3665_s27 = smov 0   ;;  %s3667_s28 = smov 0  }
  0x1c   :  { %s3669_s29 = smov 0   ;;  %s3671_s30 = smov 0  }
  0x1d   :  { %s3673_s0 = smov 0  }
  0x1e LB: > { %4399 = sst [smem:[#allocation24_spill]] %s3506_s22  ;;  %s3707_s17 = sadd.s32 4294967295, %s3542_s0   ;;  %s3542_s0 = sphi %s3673_s0, %s36_s0   ;;  %s3538_s30 = sphi %s3671_s30, %s4492_s30   ;;  %s3534_s29 = sphi %s3669_s29, %s4491_s29   ;;  %s3530_s28 = sphi %s3667_s28, %s4490_s28   ;;  %s3526_s27 = sphi %s3665_s27, %s4489_s27   ;;  %s3522_s26 = sphi %s3663_s26, %s4488_s26   ;;  %s3518_s25 = sphi %s3661_s25, %s4487_s25   ;;  %s3514_s24 = sphi %s3659_s24, %s4486_s24   ;;  %s3510_s23 = sphi %s3657_s23, %s4485_s23   ;;  %s3506_s22 = sphi %s3655_s22, %s4484_s22   ;;  %s3502_s21 = sphi %s3653_s21, %s4483_s21  }
  0x1f   : > { %4400 = sst [smem:[#allocation25_spill]] %s3510_s23  ;;  %s2625_s18 = sadd.s32 4294967294, %s3542_s0  }
  0x20   : > { %4401 = sst [smem:[#allocation26_spill]] %s3514_s24  ;;  %p4355_p0 = scmp.eq.s32.totalorder %s3542_s0, 0 }
  0x21   : > { %4402 = sst [smem:[#allocation27_spill]] %s3518_s25  ;;  %p68_p1 = scmp.ne.s32.totalorder %s3518_s25, %s3514_s24 }
  0x22   : > { %4403 = sst [smem:[#allocation28_spill]] %s3522_s26  ;;  %p4356_p2 = scmp.eq.s32.totalorder %s3707_s17, 0 }
  0x23   : > { %4404 = sst [smem:[#allocation29_spill]] %s3526_s27  ;;  %p156_p3 = scmp.ne.s32.totalorder %s3510_s23, %s3506_s22 }
  0x24   : > { %4405 = sst [smem:[#allocation30_spill]] %s3530_s28  ;;  %p162_p4 = scmp.ne.s32.totalorder %s3506_s22, %s3502_s21 }
  0x25   : > { %4406 = sst [smem:[#allocation31_spill]] %s3534_s29  ;;  %p3720_p5 = por %p4356_p2, %p68_p1 }
  0x26   : > { %4407 = sst [smem:[#allocation32_spill]] %s3538_s30  ;;  %p3727_p7 = por %p156_p3, %p4355_p0 }
  0x27   : > { %4408 = sst [smem:[#allocation33_spill]] %s3542_s0  ;;  %p3733_p8 = por %p162_p4, %p4356_p2 }
  0x28   : > { %4409 = sst [smem:[#allocation34_spill]] %s3707_s17  ;;  %p478_p9 = scmp.eq.s32.totalorder %s2625_s18, 3 }
  0x29   : > { %s4410_s20 = scalar_select %p3720_p5, 1, 0 }
  0x2a   : > { %s4413_s19 = scalar_select %p3733_p8, 1, 0 }
  0x2b   : > { %4411 = sst [smem:[#allocation35_spill]] %s4410_s20  ;;  %p2626_p10 = scmp.ge.s32.totalorder %s3542_s0, 1 }
  0x2c   : > { %4414 = sst [smem:[#allocation36_spill]] %s4413_s19  ;;  %p485_p11 = scmp.lt.s32.totalorder %s3542_s0, 5 }
  0x2d   : > { %p3739_p12 = por %p478_p9, %p68_p1  ;;  %s3544_s28 = smov [#allocation7]  }
  0x2e   : > { %p3743_p13 = pnand %p2626_p10, %p485_p11  ;;  %s498_s15 = sshll.u32 %s3544_s28, 4  ;;  %s499_s15 = int_to_ptr.vmem [resolvable:$true] %s498_s15 }
  0x2f   : > { %s4415_s21 = scalar_select %p3739_p12, 1, 0 }
  0x30   : > { %p2940_p3 = pneg %p3743_p13  ;;  %p62_p1 = scmp.ne.s32.totalorder %s3522_s26, %s3518_s25 }
  0x31   : > { %4416 = sst [smem:[#allocation37_spill]] %s4415_s21  ;;  %s3185_s21 = scalar_lea.vmem %s499_s15, 16 }
  0x32   : > { %p3751_p4 = pnand %p2940_p3, %p4356_p2  ;;  %p3186_p10 = scmp.ne.s32.totalorder %s499_s15, %s3185_s21 }
  0x33   : > { %s3192_s28 = scalar_lea.vmem %s499_s15, 32  ;;  %p3193_p0 = scmp.lt.s32.totalorder %s499_s15, %s499_s15 }
  0x34   : > { %p4361_p9 = pneg %p3751_p4  ;;  %p3194_p12 = scmp.lt.s32.totalorder %s3192_s28, %s3185_s21 }
  0x36   : > { %p3188_p11 = pnand %p3186_p10, %p4361_p9  ;;  %p3195_p3 = por %p3194_p12, %p3193_p0 }
  0x38   : > { %p3189_p6 = pneg %p3188_p11 }
  0x3a   : > { %p3196_p2 = pnand %p3195_p3, %p3189_p6 }
  0x3c   : > { %3199 = shalt.err (!%p3196_p2)
}
  0x3d   : > { %s4419_s2 = sld [smem:[#allocation45_spill]]  ;;  %p4420_p0 = scmp.eq.s32.totalorder %s3542_s0, 0 }
  0x3e   : > { %p4421_p6 = scmp.eq.s32.totalorder %s3707_s17, 3  ;;  %p4362_p10 = scmp.lt.s32.totalorder %s3542_s0, 4 }
  0x3f   : > { %p64_p2 = por %p4420_p0, %p62_p1  ;;  %s4364_s21 = sand.u32 1, %s3542_s0  }
  0x40   : > { %p3779_p12 = por %p4421_p6, %p62_p1  ;;  %s4360_s18 = sand.u32 1, %s3522_s26  }
  0x41   : > { %s2630_s28 = sshll.u32 %s4360_s18, 4  ;;  %s2736_s13 = sshll.u32 %s3538_s30, 8 }
  0x42   : > { %s4422_s11 = scalar_select %p3779_p12, 1, 0 }
  0x43   : > { %2943 = dma.hbm_to_vmem [thread:$0]  (!%p3751_p4), %s4419_s2, 16, %s499_s15, [#allocation6]  }
  0x44   : > { %4423 = sst [smem:[#allocation38_spill]] %s4422_s11  ;;  %s524_s15 = scalar_lea.vmem [#allocation2], %s2630_s28 }
  0x45   : > { %s4424_s8 = sld [smem:[#allocation43_spill]]  ;;  %s531_s2 = sshll.u32 %s524_s15, 4  ;;  %s532_s2 = int_to_ptr.vmem [resolvable:$true] %s531_s2 }
  0x46   : > { %p3794_p11 = pnand %p4362_p10, %p64_p2  ;;  %s3800_s11 = scalar_lea.sflag [#allocation3], %s4364_s21 }
  0x47   : > { %s3213_s18 = scalar_lea.vmem %s532_s2, 256  ;;  %s3545_s5 = smov [#allocation2]  }
  0x48   : > { %p3202_p1 = pneg %p3794_p11  ;;  %p3214_p3 = scmp.ne.s32.totalorder %s532_s2, %s3213_s18 }
  0x4a   : > { %p3216_p0 = pnand %p3214_p3, %p3202_p1 }
  0x4b   : > { %s530_s7 = scalar_lea.hbm %s4424_s8, %s2736_s13  ;;  %s3218_s8 = sshll.u32 %s3545_s5, 4  ;;  %s3219_s8 = int_to_ptr.vmem [resolvable:$false] %s3218_s8 }
  0x4c   : > { %p3217_p6 = pneg %p3216_p0  ;;  %s3220_s9 = scalar_lea.vmem %s3219_s8, 512 }
  0x4d   : > { %p3221_p2 = scmp.lt.s32.totalorder %s532_s2, %s3219_s8  ;;  %p3222_p9 = scmp.lt.s32.totalorder %s3220_s9, %s3213_s18 }
  0x4f   : > { %p3223_p10 = por %p3222_p9, %p3221_p2 }
  0x51   : > { %p3224_p12 = pnand %p3223_p10, %p3217_p6 }
  0x53   : > { %3227 = shalt.err (!%p3224_p12)
}
  0x54   : > { %s3546_s13 = smov 128   ;;  %s3547_s28 = smov 8  }
  0x55   : > { %2950 = dma.hbm_to_vmem [thread:$0]  (!%p3794_p11), %s530_s7, 256, %s532_s2, %s3800_s11, %s3546_s13, %s3546_s13, %s3547_s28  }
  0x56   : > { %s4426_s15 = sand.u32 1, %s3522_s26   ;;  %p4427_p3 = scmp.lt.s32.totalorder %s3542_s0, 4 }
  0x57   : > { %s2633_s5 = sshll.u32 %s4426_s15, 1  ;;  %s2737_s21 = sshll.u32 %s3538_s30, 5 }
  0x58   : > { %p3816_p0 = pnand %p4427_p3, %p3727_p7  ;;  %s545_s8 = scalar_lea.vmem [#allocation5], %s2633_s5 }
  0x59   : > { %s552_s9 = sshll.u32 %s545_s8, 4  ;;  %s4429_s1 = sld [smem:[#allocation44_spill]]  ;;  %s553_s9 = int_to_ptr.vmem [resolvable:$true] %s552_s9 }
  0x5a   : > { %s4430_s25 = sand.u32 1, %s3542_s0   ;;  %s3241_s2 = scalar_lea.vmem %s553_s9, 32 }
  0x5b   : > { %s3826_s17 = scalar_lea.sflag [#allocation6], %s4430_s25  ;;  %p3242_p9 = scmp.ne.s32.totalorder %s553_s9, %s3241_s2 }
  0x5c   : > { %s3548_s7 = smov [#allocation5]  }
  0x5d   : > { %p3244_p12 = pnand %p3242_p9, %p3202_p1  ;;  %s3246_s16 = sshll.u32 %s3548_s7, 4  ;;  %s3247_s16 = int_to_ptr.vmem [resolvable:$false] %s3246_s16 }
  0x5e   : > { %s3248_s13 = scalar_lea.vmem %s3247_s16, 64  ;;  %p3249_p10 = scmp.lt.s32.totalorder %s553_s9, %s3247_s16 }
  0x5f   : > { %s551_s20 = scalar_lea.hbm %s4429_s1, %s2737_s21  ;;  %p3245_p7 = pneg %p3244_p12 }
  0x60   : > { %p3250_p6 = scmp.lt.s32.totalorder %s3248_s13, %s3241_s2 }
  0x62   : > { %p3251_p2 = por %p3250_p6, %p3249_p10 }
  0x64   : > { %p3252_p3 = pnand %p3251_p2, %p3245_p7 }
  0x66   : > { %3255 = shalt.err (!%p3252_p3)
}
  0x67   : > { %s3549_s22 = smov 16   ;;  %s3550_s25 = smov 1  }
  0x68   : > { %2953 = dma.hbm_to_vmem [thread:$0]  (!%p3794_p11), %s551_s20, 32, %s553_s9, %s3826_s17, %s3549_s22, %s3549_s22, %s3550_s25  }
  0x69   : > { %s564_s19 = sand.u32 1, %s3510_s23   ;;  %s45_s21 = sadd.s32 1, %s3534_s29 }
  0x6a   : > { %s2914_s28 = smul.u32 192, %s564_s19  ;;  %p46_p1 = scmp.ge.s32.totalorder %s45_s21, 2 }
  0x6b   : > { %s2915_s15 = smul.u32 3072, %s3534_s29  ;;  %s4432_s5 = sadd.s32 1, %s3538_s30 }
  0x6c   : > { %s4494_s21 = smov (%p46_p1, %s45_s21), 0  ;;  %s4496_s5 = smov (!%p46_p1, %s4432_s5), %s3538_s30 }
  0x6d   : > { %4431 = sst [smem:[#allocation39_spill]] %s4494_s21  ;;  %s146_s8 = ssub.s32 %s3534_s29, %s4494_s21 }
  0x6e   : > { %s4433_s4 = sld [smem:[#allocation47_spill]]  ;;  %p50_p11 = scmp.ge.s32.totalorder %s4496_s5, 2 }
  0x6f   : > { %p147_p9 = scmp.eq.s32.totalorder %s146_s8, 0  ;;  %s566_s20 = scalar_lea.vmem [#allocation10], %s2914_s28 }
  0x70   : > { %s573_s9 = sshll.u32 %s566_s20, 4  ;;  %s4498_s5 = smov (%p50_p11, %s4496_s5), 0  ;;  %s574_s9 = int_to_ptr.vmem [resolvable:$true] %s573_s9 }
  0x71   : > { %4434 = sst [smem:[#allocation40_spill]] %s4498_s5  ;;  %s4435_s16 = sadd.s32 1, %s3510_s23 }
  0x72   : > { %s3854_s13 = scalar_select %p147_p9, %s3510_s23, %s4435_s16  }
  0x73   : > { %s52_s22 = ssub.s32 %s3538_s30, %s4498_s5  ;;  %s3862_s1 = sshll.u32 %s564_s19, 6 }
  0x74   : > { %s3847_s27 = scalar_lea.hbm %s4433_s4, %s2915_s15  ;;  %4436 = sst [smem:[#allocation41_spill]] %s3854_s13 }
  0x75   : > { %p3858_p12 = scmp.eq.s32.totalorder %s52_s22, 0  ;;  %p3258_p7 = pneg %p3816_p0 }
  0x76   : > { %s3269_s15 = scalar_lea.vmem %s574_s9, 3072  ;;  %s3551_s28 = smov [#allocation10]  }
  0x77   : > { %p3270_p10 = scmp.ne.s32.totalorder %s574_s9, %s3269_s15  ;;  %s3274_s8 = sshll.u32 %s3551_s28, 4  ;;  %s3275_s8 = int_to_ptr.vmem [resolvable:$false] %s3274_s8 }
  0x78   : > { %s3276_s2 = scalar_lea.vmem %s3275_s8, 6144  ;;  %p3277_p3 = scmp.lt.s32.totalorder %s574_s9, %s3275_s8 }
  0x79   : > { %p3272_p6 = pnand %p3270_p10, %p3258_p7  ;;  %p3278_p1 = scmp.lt.s32.totalorder %s3276_s2, %s3269_s15 }
  0x7b   : > { %p3273_p2 = pneg %p3272_p6  ;;  %p3279_p11 = por %p3278_p1, %p3277_p3 }
  0x7d   : > { %p3280_p9 = pnand %p3279_p11, %p3273_p2 }
  0x7f   : > { %3283 = shalt.err (!%p3280_p9)
}
  0x80   : > { %s3552_s7 = smov 192   ;;  %s3553_s19 = smov 12  }
  0x81   : > { %2956 = dma.hbm_to_vmem [thread:$0]  (!%p3816_p0), %s3847_s27, 3072, %s574_s9, %s3800_s11, %s3552_s7, %s3552_s7, %s3553_s19  }
  0x82   : > { %s4438_s20 = sadd.s32 1, %s3522_s26  ;;  %s3881_s22 = sshll.u32 %s3534_s29, 10 }
  0x83   : > { %s3878_s16 = scalar_select %p3858_p12, %s3522_s26, %s4438_s20  }
  0x84   : > { %s4440_s6 = sld [smem:[#allocation49_spill]]  ;;  %s594_s2 = scalar_lea.vmem [#allocation11], %s3862_s1 }
  0x85   : > { %4439 = sst [smem:[#allocation42_spill]] %s3878_s16  ;;  %s601_s4 = sshll.u32 %s594_s2, 4  ;;  %s602_s4 = int_to_ptr.vmem [resolvable:$true] %s601_s4 }
  0x86   : > { %s3297_s5 = scalar_lea.vmem %s602_s4, 1024  ;;  %s3554_s27 = smov [#allocation11]  }
  0x87   : > { %p3298_p10 = scmp.ne.s32.totalorder %s602_s4, %s3297_s5  ;;  %s3302_s9 = sshll.u32 %s3554_s27, 4  ;;  %s3303_s9 = int_to_ptr.vmem [resolvable:$false] %s3302_s9 }
  0x88   : > { %s3304_s25 = scalar_lea.vmem %s3303_s9, 2048  ;;  %p3305_p12 = scmp.lt.s32.totalorder %s602_s4, %s3303_s9 }
  0x89   : > { %p3300_p6 = pnand %p3298_p10, %p3258_p7  ;;  %p3306_p3 = scmp.lt.s32.totalorder %s3304_s25, %s3297_s5 }
  0x8a   : > { %s600_s8 = scalar_lea.hbm %s4440_s6, %s3881_s22 }
  0x8b   : > { %p3301_p2 = pneg %p3300_p6  ;;  %p3307_p1 = por %p3306_p3, %p3305_p12 }
  0x8d   : > { %p3308_p11 = pnand %p3307_p1, %p3301_p2 }
  0x8f   : > { %3311 = shalt.err (!%p3308_p11)
}
  0x90   : > { %s3555_s7 = smov 64   ;;  %s3556_s19 = smov 4  }
  0x91   : > { %2959 = dma.hbm_to_vmem [thread:$0]  (!%p3816_p0), %s600_s8, 1024, %s602_s4, %s3826_s17, %s3555_s7, %s3555_s7, %s3556_s19  }
  0x92   : > { %s3557_s20 = smov [#allocation8]   ;;  %s4441_s10 = sld [smem:[#allocation53_spill]] }
  0x93   : > { %s509_s15 = sshll.u32 %s3557_s20, 4  ;;  %p4442_p10 = pneg %p3751_p4  ;;  %s510_s15 = int_to_ptr.vmem [resolvable:$true] %s509_s15 }
  0x94   : > { %s3323_s27 = scalar_lea.vmem %s510_s15, 16  ;;  %s3330_s9 = scalar_lea.vmem %s510_s15, 32 }
  0x95   : > { %p3324_p9 = scmp.ne.s32.totalorder %s510_s15, %s3323_s27  ;;  %p3331_p12 = scmp.lt.s32.totalorder %s510_s15, %s510_s15 }
  0x96   : > { %p3332_p3 = scmp.lt.s32.totalorder %s3330_s9, %s3323_s27 }
  0x97   : > { %p3326_p6 = pnand %p3324_p9, %p4442_p10 }
  0x98   : > { %p3333_p1 = por %p3332_p3, %p3331_p12 }
  0x99   : > { %p3327_p2 = pneg %p3326_p6 }
  0x9b   : > { %p3334_p11 = pnand %p3333_p1, %p3327_p2 }
  0x9d   : > { %3337 = shalt.err (!%p3334_p11)
}
  0x9e   : > { %s4443_s3 = sld [smem:[#allocation46_spill]]  ;;  %s633_s25 = scalar_lea.vmem [#allocation12], %s3862_s1 }
  0x9f   : > { %s640_s20 = sshll.u32 %s633_s25, 4  ;;  %s4444_s12 = sld [smem:[#allocation55_spill]]  ;;  %s641_s20 = int_to_ptr.vmem [resolvable:$true] %s640_s20 }
  0xa0   : > { %s3351_s27 = scalar_lea.vmem %s641_s20, 1024  ;;  %s3558_s14 = smov [#allocation12]  }
  0xa1   : > { %p3352_p9 = scmp.ne.s32.totalorder %s641_s20, %s3351_s27  ;;  %s3356_s9 = sshll.u32 %s3558_s14, 4  ;;  %s3357_s9 = int_to_ptr.vmem [resolvable:$false] %s3356_s9 }
  0xa2   : > { %s3358_s4 = scalar_lea.vmem %s3357_s9, 2048  ;;  %p3359_p2 = scmp.lt.s32.totalorder %s641_s20, %s3357_s9 }
  0xa3   : > { %p3354_p10 = pnand %p3352_p9, %p3258_p7  ;;  %p3360_p12 = scmp.lt.s32.totalorder %s3358_s4, %s3351_s27 }
  0xa4   : > { %2946 = dma.hbm_to_vmem [thread:$0]  (!%p3751_p4), %s4443_s3, 16, %s510_s15, [#allocation9]  }
  0xa5   : > { %s666_s5 = scalar_lea.hbm %s4444_s12, %s3881_s22  ;;  %p3355_p6 = pneg %p3354_p10 }
  0xa6   : > { %p3361_p4 = por %p3360_p12, %p3359_p2 }
  0xa8   : > { %p3362_p3 = pnand %p3361_p4, %p3355_p6 }
  0xaa   : > { %3365 = shalt.err (!%p3362_p3)
}
  0xab   : > { %s4445_s25 = scalar_lea.hbm %s4441_s10, %s3881_s22  ;;  %s660_s28 = scalar_lea.vmem [#allocation13], %s3862_s1 }
  0xac   : > { %2962 = dma.hbm_to_vmem [thread:$0]  (!%p3816_p0), %s4445_s25, 1024, %s641_s20, %s3800_s11, %s3555_s7, %s3555_s7, %s3556_s19  }
  0xad   : > { %s667_s2 = sshll.u32 %s660_s28, 4  ;;  %s3559_s14 = smov [#allocation13]   ;;  %s668_s2 = int_to_ptr.vmem [resolvable:$true] %s667_s2 }
  0xae   : > { %s3379_s27 = scalar_lea.vmem %s668_s2, 1024  ;;  %s3384_s9 = sshll.u32 %s3559_s14, 4  ;;  %s3385_s9 = int_to_ptr.vmem [resolvable:$false] %s3384_s9 }
  0xaf   : > { %p3380_p1 = scmp.ne.s32.totalorder %s668_s2, %s3379_s27  ;;  %s3386_s4 = scalar_lea.vmem %s3385_s9, 2048 }
  0xb0   : > { %p3387_p10 = scmp.lt.s32.totalorder %s668_s2, %s3385_s9  ;;  %p3388_p6 = scmp.lt.s32.totalorder %s3386_s4, %s3379_s27 }
  0xb1   : > { %p3382_p11 = pnand %p3380_p1, %p3258_p7 }
  0xb2   : > { %p3389_p2 = por %p3388_p6, %p3387_p10 }
  0xb3   : > { %p3383_p9 = pneg %p3382_p11 }
  0xb5   : > { %p3390_p12 = pnand %p3389_p2, %p3383_p9 }
  0xb7   : > { %3393 = shalt.err (!%p3390_p12)
}
  0xb8   : > { %2965 = dma.hbm_to_vmem [thread:$0]  (!%p3816_p0), %s666_s5, 1024, %s668_s2, %s3826_s17, %s3555_s7, %s3555_s7, %s3556_s19  }
  0xb9   : > { %697 = sbr.rel (%p3743_p13) target bundleno = 3388 (0xd3c), region = 84  ;;  %s4446_s20 = sld [smem:[#allocation34_spill]] (!%p3743_p13) }
  0xba   : > { %s4447_s15 = sld [smem:[#allocation27_spill]] (!%p3743_p13) }
  0xbf   : > { %s699_s25 = sand.u32 1, %s4446_s20  }
  0xc0   : > { %s3947_s28 = sand.u32 1, %s4447_s15   ;;  %s700_s27 = scalar_lea.sflag [#allocation3], %s699_s25 }
  0xc1   : > { %s4374_s18 = sshll.u32 %s3947_s28, 4 }
  0xc2   : > { %s3952_s14 = scalar_lea.vmem [#allocation2], %s4374_s18 }
  0xc3   : > { %3465 = dma.done.wait (%p3720_p5), %s700_s27, 256  }
  0xc4   : > { %3467 = vsyncadd (%p3720_p5), %s700_s27, 4294967040  ;;  %s2648_s24 = sshll.u32 %s3947_s28, 1  ;;  %s709_s17 = scalar_lea.sflag [#allocation6], %s699_s25 }
  0xc5   : > { %s3959_s22 = scalar_lea.vmem [#allocation5], %s2648_s24 }
  0xc6   : > { %3469 = dma.done.wait (%p3720_p5), %s709_s17, 32  }
  0xc7   : > { %3471 = vsyncadd (%p3720_p5), %s709_s17, 4294967264  ;;  %p4449_p13 = scmp.eq.s32.totalorder %s4446_s20, 0 }
  0xc9   : > { %3473 = dma.done.wait (%p4449_p13), [#allocation6], 16   ;;  %p4450_p0 = pmov %p4449_p13 }
  0xcb   : > { %3475 = vsyncadd (%p4450_p0), [#allocation6], 4294967280  ;;  %p4451_p7 = pmov %p4450_p0 }
  0xcc   : > { %p4452_p4 = pmov %p4450_p0 }
  0xcd   : > { %3477 = dma.done.wait (%p4451_p7), [#allocation9], 16  }
  0xce   : > { %3479 = vsyncadd (%p4452_p4), [#allocation9], 4294967280  ;;  %s4453_s7 = sld [smem:[#allocation24_spill]] }
  0xd4   : > { %s727_s5 = sand.u32 1, %s4453_s7  }
  0xd5   : > { %s2916_s2 = smul.u32 192, %s727_s5 }
  0xd7   : > { %s3974_s9 = scalar_lea.vmem [#allocation10], %s2916_s2 }
  0xd8   : > { %3481 = dma.done.wait (%p3733_p8), %s700_s27, 3072  }
  0xd9   : > { %3483 = vsyncadd (%p3733_p8), %s700_s27, 4294964224  ;;  %s2651_s4 = sshll.u32 %s727_s5, 6 }
  0xda   : > { %s3980_s1 = scalar_lea.vmem [#allocation11], %s2651_s4 }
  0xdb   : > { %3485 = dma.done.wait (%p3733_p8), %s709_s17, 1024  }
  0xdc   : > { %3487 = vsyncadd (%p3733_p8), %s709_s17, 4294966272  ;;  %s3986_s11 = scalar_lea.vmem [#allocation12], %s2651_s4 }
  0xdd   : > { %3489 = dma.done.wait (%p3733_p8), %s700_s27, 1024  }
  0xde   : > { %3491 = vsyncadd (%p3733_p8), %s700_s27, 4294966272  ;;  %s3992_s20 = scalar_lea.vmem [#allocation13], %s2651_s4 }
  0xdf   : > { %3493 = dma.done.wait (%p3733_p8), %s709_s17, 1024  }
  0xe0   : > { %3495 = vsyncadd (%p3733_p8), %s709_s17, 4294966272  ;;  %s4455_s15 = sld [smem:[#allocation29_spill]]  ;;  %v884_v0 = vlaneseq  ;;  %v3560_v2 = vmov 0.0   ;;  %s4464_s0 = sshll.u32 %s3947_s28, 4 }
  0xe1   : > { %s4459_s30 = sld [smem:[#allocation48_spill]]  ;;  %s4042_s12 = scalar_lea.vmem [#allocation14], %s4464_s0 }
  0xe2   : > { %v885_v1 = vand.u32 127, %v884_v0  ;;  %s4460_s17 = sld [smem:[#allocation54_spill]] }
  0xe3   : > { %s4461_s5 = sld [smem:[#allocation56_spill]] }
  0xe4   : > { %vm886_vm0 = vcmp.lt.s32.totalorder %v885_v1, 32  ;;  %s4462_s6 = sld [smem:[#allocation57_spill]] }
  0xe5   : > { %v4017_v3 = vsel %vm886_vm0, 1.0, %v3560_v2  ;;  %s4463_s13 = sld [smem:[#allocation58_spill]] }
  0xe6   : > { %p857_p5 = scmp.lt.s32.totalorder %s4455_s15, 1  ;;  %p2656_p8 = scmp.ne.s32.totalorder %s4455_s15, 0 }
  0xe8   : > { %s4000_s8 = scalar_select %p857_p5, %s4455_s15, 1 }
  0xe9   : > { %892 = sbr.rel (%p2656_p8) target bundleno = 554 (0x22a), region = 120 }
  0xea   : > { %s2917_s25 = smul.u32 3, %s4000_s8  ;;  %s872_s7 = scalar_lea.vmem %s4460_s17, %s4000_s8 }
  0xeb   : > { %s875_s2 = scalar_lea.vmem %s4461_s5, %s4000_s8  ;;  %s878_s18 = scalar_lea.vmem %s4462_s6, %s4000_s8 }
  0xec   : > { %s4022_s29 = scalar_lea.vmem %s4459_s30, %s2917_s25  ;;  %s881_s23 = scalar_lea.vmem %s4463_s13, %s4000_s8 }
  0xee   : > { %v893_v4 = vld [vmem:[%s3952_s14] sm:$0xff]  ;;  %v894_v5 = vld [vmem:[%s3952_s14 + $0x8] sm:$0xff] }
  0xef   : > { %v897_v6 = vmul.f32 %v4017_v3, %v893_v4  ;;  %v898_v7 = vmul.f32 %v4017_v3, %v894_v5  ;;  %v2657_v25 = vld [vmem:[#allocation7] ss:$0 sm:$0xff]  ;;  %v2658_v27 = vld [vmem:[#allocation8] ss:$0 sm:$0xff] }
  0xf1   : > { %899 = vadd.xlane.f32.xlu0 %v897_v6 }
  0xf5   : > { %901 = vadd.xlane.f32.xlu0 %v898_v7 }
 0x17a   : > { %v900_v8 = vpop.xlane.xlu0 %899 }
 0x17b   : > { %v903_v9 = vmul.f32 0.03125, %v900_v8 }
 0x17d   : > { %v905_v10 = vsub.f32 %v893_v4, %v903_v9 }
 0x17e   : > { %v902_v11 = vpop.xlane.xlu0 %901 }
 0x17f   : > { %v904_v12 = vmul.f32 0.03125, %v902_v11  ;;  %v907_v13 = vmul.f32 %v4017_v3, %v905_v10 }
 0x181   : > { %v906_v14 = vsub.f32 %v894_v5, %v904_v12  ;;  %v909_v15 = vmul.f32 %v907_v13, %v907_v13 }
 0x183   : > { %911 = vadd.xlane.f32.xlu1 %v909_v15  ;;  %v908_v16 = vmul.f32 %v4017_v3, %v906_v14 }
 0x185   : > { %v910_v17 = vmul.f32 %v908_v16, %v908_v16 }
 0x187   : > { %913 = vadd.xlane.f32.xlu1 %v910_v17 }
 0x20c   : > { %v912_v18 = vpop.xlane.xlu1 %911 }
 0x20d   : > { %v915_v19 = vmul.f32 0.03125, %v912_v18 }
 0x20f   : > { %v917_v20 = vadd.f32 1e-12, %v915_v19 }
 0x210   : > { %v914_v21 = vpop.xlane.xlu1 %913 }
 0x211   : > { %3081 = vrsqrt.f32 %v917_v20  ;;  %v916_v22 = vmul.f32 0.03125, %v914_v21 }
 0x213   : > { %v918_v23 = vadd.f32 1e-12, %v916_v22 }
 0x215   : > { %3083 = vrsqrt.f32 %v918_v23 }
 0x21e   : > { %v3082_v24 = vpop.eup %3081 }
 0x21f   : > { %v921_v26 = vmul.f32 %v3082_v24, %v905_v10 }
 0x221   : > { %v929_v28 = vmul.f32 %v2657_v25, %v921_v26 }
 0x222   : > { %v3084_v29 = vpop.eup %3083 }
 0x223   : > { %v937_v30 = vadd.f32 %v2658_v27, %v929_v28  ;;  %v922_v31 = vmul.f32 %v3084_v29, %v906_v14 }
 0x225   : > { %939 = vst [vmem:[%s4042_s12] sm:$0xff] %v937_v30  ;;  %v930_v32 = vmul.f32 %v2657_v25, %v922_v31 }
 0x227   : > { %v938_v33 = vadd.f32 %v2658_v27, %v930_v32 }
 0x229   : > { %940 = vst [vmem:[%s4042_s12 + $0x8] sm:$0xff] %v938_v33 }
 0x22a PF: > { %v3090_v34 = vld [vmem:[%s3974_s9 + $0xac] ss:$12 sps:$4 sm:$0xff]   ;;  %2794 = vmatprep.subr.bf16.mxu1 %v3560_v2  ;;  %v3092_v35 = vld [vmem:[%s3974_s9 + $0xa8] ss:$12 sps:$4 sm:$0xff]   ;;  %v3561_v36 = vmov 0   ;;  %vm3562_vm1 = vmmov 0  }
 0x22b   : > { %1155 = vmatprep.mubr.bf16.mxu0 %v3561_v36  ;;  %2810 = vmatprep.mubr.msk.bf16.mxu1 %vm3562_vm1, %v3560_v2  ;;  %v3093_v37 = vld [vmem:[%s3974_s9 + $0x94] ss:$12 sps:$4 sm:$0xff]   ;;  %v3095_v38 = vld [vmem:[%s3974_s9 + $0x90] ss:$12 sps:$4 sm:$0xff]   ;;  %v3098_v40 = vld [vmem:[%s3974_s9 + $0x78] ss:$12 sps:$4 sm:$0xff]  }
 0x22c   : > { %1123 = vmatprep.subr.bf16.mxu0 %v3090_v34  ;;  %v3096_v39 = vld [vmem:[%s3974_s9 + $0x7c] ss:$12 sps:$4 sm:$0xff]   ;;  %v3099_v41 = vld [vmem:[%s3974_s9 + $0x64] ss:$12 sps:$4 sm:$0xff]   ;;  %v3101_v42 = vld [vmem:[%s3974_s9 + $0x60] ss:$12 sps:$4 sm:$0xff]  }
 0x22d   : > { %1124 = vmatpush1.bf16.msra.mxu0 %v3092_v35  ;;  %v3102_v43 = vld [vmem:[%s3974_s9 + $0x4c] ss:$12 sps:$4 sm:$0xff]   ;;  %v3114_v44 = vld [vmem:[%s3974_s9 + $0xb0] ss:$12 sps:$4 sm:$0xff]   ;;  %v3104_v46 = vld [vmem:[%s3974_s9 + $0x48] ss:$12 sps:$4 sm:$0xff]  }
 0x22e   : > { %1125 = vmatprep.subr.bf16.mxu0 %v3093_v37  ;;  %2795 = vmatpush3.bf16.msra.mxu1 %v3114_v44  ;;  %v3115_v45 = vld [vmem:[%s3974_s9 + $0x98] ss:$12 sps:$4 sm:$0xff]   ;;  %v3105_v47 = vld [vmem:[%s3974_s9 + $0x34] ss:$12 sps:$4 sm:$0xff]   ;;  %v3107_v49 = vld [vmem:[%s3974_s9 + $0x30] ss:$12 sps:$4 sm:$0xff]  }
 0x22f   : > { %2796 = vmatprep.subr.bf16.mxu1 %v3560_v2  ;;  %v3116_v48 = vld [vmem:[%s3974_s9 + $0x80] ss:$12 sps:$4 sm:$0xff]   ;;  %v3108_v50 = vld [vmem:[%s3974_s9 + $0x1c] ss:$12 sps:$4 sm:$0xff]   ;;  %v3110_v52 = vld [vmem:[%s3974_s9 + $0x18] ss:$12 sps:$4 sm:$0xff]  }
 0x230   : > { %v3117_v51 = vld [vmem:[%s3974_s9 + $0x68] ss:$12 sps:$4 sm:$0xff]   ;;  %v3111_v53 = vld [vmem:[%s3974_s9 + $0x4] ss:$12 sps:$4 sm:$0xff]   ;;  %v3113_v55 = vld [vmem:[%s3974_s9] ss:$12 sps:$4 sm:$0xff]  }
 0x231   : > { %1126 = vmatpush1.bf16.msra.mxu0 %v3095_v38  ;;  %v3118_v54 = vld [vmem:[%s3974_s9 + $0x50] ss:$12 sps:$4 sm:$0xff]   ;;  %v3119_v58 = vld [vmem:[%s3974_s9 + $0x38] ss:$12 sps:$4 sm:$0xff]   ;;  %v3120_v60 = vld [vmem:[%s3974_s9 + $0x20] ss:$12 sps:$4 sm:$0xff]  }
 0x232   : > { %1127 = vmatprep.subr.bf16.mxu0 %v3096_v39  ;;  %2797 = vmatpush3.bf16.msra.mxu1 %v3115_v45  ;;  %v4081_v56 = vld [vmem:[%s4042_s12] sm:$0xff]  ;;  %v4084_v57 = vld [vmem:[%s4042_s12 + $0x8] sm:$0xff]  ;;  %v981_v62 = vshrl.u32 %v884_v0, 7  ;;  %vm1219_vm2 = vcmask 130048   ;;  %s3563_s10 = smov 112   ;;  %vm1372_vm3 = vcmask 64512  }
 0x233   : > { %2798 = vmatprep.subr.bf16.mxu1 %v3560_v2  ;;  %v977_v59 = vpack.c.bf16 %v4084_v57, %v4081_v56  ;;  %v3121_v61 = vld [vmem:[%s3974_s9 + $0x8] ss:$12 sps:$4 sm:$0xff]   ;;  %v978_v1 = vld [vmem:[%s4022_s29] sm:$0x7]  ;;  %s3564_s26 = smov 16   ;;  %vm1883_vm4 = vcmask 261120  }
 0x234   : > { %v982_v63 = vsub.s32 0, %v981_v62  ;;  %v986_v4 = vsub.s32 1, %v981_v62  ;;  %v990_v12 = vsub.s32 2, %v981_v62  ;;  %v2683_v22 = vld [vmem:[%s3959_s22] ss:$0 sm:$0xff]  ;;  %vm2706_vm5 = vmpackc.low %vm1883_vm4, %vm1883_vm4  ;;  %s4465_s0 = sld [smem:[#allocation50_spill]] }
 0x235   : > { %1128 = vmatpush1.bf16.msra.mxu0 %v3098_v40  ;;  %v2684_v26 = vld [vmem:[%s3959_s22 + $0x1] ss:$0 sm:$0xff]  ;;  %s4467_s14 = sld [smem:[#allocation51_spill]]  ;;  %s2343_s30 = sshll.u32 %s4042_s12, 4  ;;  %s4272_s30 = int_to_ptr.vmem [resolvable:$true] %s2343_s30 }
 0x236   : > { %1129 = vmatprep.subr.bf16.mxu0 %v3099_v41  ;;  %2799 = vmatpush3.bf16.msra.mxu1 %v3116_v48  ;;  %v983_v5 = vrot.slane %v978_v1, %v982_v63  ;;  %v987_v6 = vrot.slane %v978_v1, %v986_v4  ;;  %v991_v14 = vrot.slane %v978_v1, %v990_v12  ;;  %s4473_s17 = sld [smem:[#allocation30_spill]] }
 0x237   : > { %2800 = vmatprep.subr.bf16.mxu1 %v3560_v2  ;;  %s4477_s13 = sld [smem:[#allocation59_spill]] }
 0x239   : > { %1130 = vmatpush1.bf16.msra.mxu0 %v3101_v42 }
 0x23a   : > { %1131 = vmatprep.subr.bf16.mxu0 %v3102_v43  ;;  %2801 = vmatpush3.bf16.msra.mxu1 %v3117_v51  ;;  %s4466_s21 = scalar_lea.vmem %s4465_s0, %s4000_s8 }
 0x23b   : > { %2802 = vmatprep.subr.bf16.mxu1 %v3560_v2  ;;  %s4468_s22 = scalar_lea.vmem %s4467_s14, %s4000_s8 }
 0x23c   : > { %s2741_s29 = sshll.u32 %s4473_s17, 8 }
 0x23d   : > { %1132 = vmatpush1.bf16.msra.mxu0 %v3104_v46  ;;  %s4270_s16 = scalar_lea.hbm %s4477_s13, %s2741_s29 }
 0x23e   : > { %1133 = vmatprep.subr.bf16.mxu0 %v3105_v47  ;;  %2803 = vmatpush3.bf16.msra.mxu1 %v3118_v54 }
 0x23f   : > { %2804 = vmatprep.subr.bf16.mxu1 %v3560_v2 }
 0x241   : > { %1134 = vmatpush1.bf16.msra.mxu0 %v3107_v49 }
 0x242   : > { %1135 = vmatprep.subr.bf16.mxu0 %v3108_v50  ;;  %2805 = vmatpush3.bf16.msra.mxu1 %v3119_v58 }
 0x243   : > { %2806 = vmatprep.subr.bf16.mxu1 %v3560_v2 }
 0x245   : > { %1136 = vmatpush1.bf16.msra.mxu0 %v3110_v52 }
 0x246   : > { %1137 = vmatprep.subr.bf16.mxu0 %v3111_v53  ;;  %2807 = vmatpush3.bf16.msra.mxu1 %v3120_v60 }
 0x247   : > { %2808 = vmatprep.subr.bf16.mxu1 %v3560_v2 }
 0x249   : > { %1138 = vmatpush1.bf16.msra.mxu0 %v3113_v55 }
 0x24a   : > { %2854 = vmatprep.subr.bf16.mxu0 %v3560_v2  ;;  %2809 = vmatpush3.bf16.msra.mxu1 %v3121_v61 }
 0x24b   : > { %2814 = vmatprep.subr.mxu1 %v3560_v2 }
 0x24c   : > { %1156 = vmatmul.mubr.bf16.vlgmr.msra.gmra.mxu0 %v977_v59 }
 0x24d   : > { %2870 = vmatprep.mubr.msk.bf16.mxu0 %vm3562_vm1, %v3560_v2  ;;  %2811 = vmatmul.mubr.bf16.vlgmr.msra.gmra.mxu1 %v977_v59 }
 0x24e   : > { %2816 = vmatprep.mubr.msk.f32.mxu1 %vm3562_vm1, %v3560_v2 }
 0x30c   : > { %v1157_v7 = vpop.f32.mrf.mxu0 }
 0x30d   : > { %v1158_v8 = vadd.f32 %v1157_v7, %v983_v5  ;;  %v1200_v16 = vpop.f32.mrf.mxu1 }
 0x30e   : > { %v1159_v9 = vpop.f32.mrf.mxu0  ;;  %v4113_v17 = vadd.f32 %v1200_v16, %v991_v14 }
 0x30f   : > { %v1160_v10 = vadd.f32 %v1159_v9, %v987_v6  ;;  %1541 = vrot.lane.b32.xlu1 %v1158_v8, %s3563_s10  ;;  %v2812_v18 = vpop.f32.mrf.mxu1 }
 0x310   : > { %v1161_v11 = vpop.f32.mrf.mxu0 }
 0x311   : > { %2815 = vmatpush3.xpose.msk.msra.mxu1 %vm1219_vm2, %v1160_v10  ;;  %v1162_v15 = vadd.f32 %v1161_v11, %v983_v5  ;;  %v1203_v19 = vpop.f32.mrf.mxu1 }
 0x312   : > { %v1163_v13 = vpop.f32.mrf.mxu0  ;;  %2819 = vmatprep.subr.mxu1 %v3560_v2  ;;  %v4119_v20 = vadd.f32 %v1203_v19, %v991_v14 }
 0x313   : > { %v1164_v0 = vadd.f32 %v1163_v13, %v987_v6  ;;  %v2813_v21 = vpop.f32.mrf.mxu1 }
 0x314   : > { %2817 = vmatmul.mubr.msk.f32.vlgmr.msra.gmra.mxu1 %vm1219_vm2, %v1158_v8 }
 0x315   : > { %1621 = vrot.lane.b32.xlu1 %v1164_v0, %s3563_s10  ;;  %2820 = vmatpush3.xpose.msk.msra.mxu1 %vm1219_vm2, %v1164_v0 }
 0x316   : > { %2821 = vmatprep.mubr.msk.f32.mxu1 %vm3562_vm1, %v3560_v2  ;;  %2824 = vmatprep.subr.mxu1 %v3560_v2 }
 0x318   : > { %2822 = vmatmul.mubr.msk.f32.vlgmr.msra.gmra.mxu1 %vm1219_vm2, %v1162_v15 }
 0x319   : > { %2826 = vmatprep.mubr.msk.f32.mxu1 %vm3562_vm1, %v3560_v2  ;;  %2825 = vmatpush3.msra.mxu1 %v4113_v17 }
 0x31a   : > { %2829 = vmatprep.subr.mxu1 %v3560_v2 }
 0x381   : > { %v1542_v42 = vpop.permute.xlu1 %1541 }
 0x387   : > { %v1622_v43 = vpop.permute.xlu1 %1621 }
 0x3d4   : > { %v1292_v23 = vpop.f32.mrf.mxu1 }
 0x3d5   : > { %v1293_v24 = vadd.f32 %v2683_v22, %v1292_v23  ;;  %v3123_v23 = vld [vmem:[%s3980_s1 + $0x30] sm:$0xff]  }
 0x3d6   : > { %v2818_v25 = vpop.f32.mrf.mxu1 }
 0x3d7   : > { %v1373_v27 = vsel %vm1372_vm3, %v1293_v24, -inf  ;;  %v3125_v25 = vld [vmem:[%s3980_s1 + $0x20] sm:$0xff]  }
 0x3d8   : > { %1374 = vmax.xlane.f32.xlu0 %v1373_v27  ;;  %v1368_v28 = vpop.f32.mrf.mxu1  ;;  %v3127_v27 = vld [vmem:[%s3980_s1 + $0x10] sm:$0xff]  }
 0x3d9   : > { %v1369_v29 = vadd.f32 %v2684_v26, %v1368_v28  ;;  %v3128_v28 = vld [vmem:[%s3980_s1 + $0x8] sm:$0xff]  }
 0x3da   : > { %v2823_v30 = vpop.f32.mrf.mxu1 }
 0x3db   : > { %v1376_v31 = vsel %vm1372_vm3, %v1369_v29, -inf }
 0x3dc   : > { %1377 = vmax.xlane.f32.xlu0 %v1376_v31 }
 0x3f2   : > { %1543 = vrot.lane.b32.xlu0 %v1160_v10, %s3563_s10 }
 0x461   : > { %v1375_v32 = vpop.xlane.xlu0 %1374 }
 0x462   : > { %v1379_v33 = vsub.f32 %v1293_v24, %v1375_v32  ;;  %v3124_v24 = vld [vmem:[%s3980_s1 + $0x28] sm:$0xff]  }
 0x464   : > { %v1381_v34 = vmul.f32 1.442695, %v1379_v33 }
 0x465   : > { %v1378_v35 = vpop.xlane.xlu0 %1377 }
 0x466   : > { %3146 = vpow2.f32 %v1381_v34  ;;  %v1380_v36 = vsub.f32 %v1369_v29, %v1378_v35  ;;  %v3129_v29 = vld [vmem:[%s3980_s1] sm:$0xff]  }
 0x468   : > { %v1383_v37 = vmul.f32 1.442695, %v1380_v36 }
 0x469   : > { %v1544_v50 = vpop.permute.xlu0 %1543 }
 0x46a   : > { %3148 = vpow2.f32 %v1383_v37 }
 0x473   : > { %v3147_v38 = vpop.eup %3146 }
 0x474   : > { %v1385_v39 = vsel %vm1372_vm3, %v3147_v38, 0.0 }
 0x475   : > { %1386 = vadd.xlane.f32.xlu1 %v1385_v39 }
 0x477   : > { %v3149_v40 = vpop.eup %3148 }
 0x478   : > { %v1388_v41 = vsel %vm1372_vm3, %v3149_v40, 0.0 }
 0x479   : > { %1389 = vadd.xlane.f32.xlu1 %v1388_v41  ;;  %v2697_v41 = vld [vmem:[%s4466_s21] ss:$0 sm:$0xff] }
 0x48a   : > { %1619 = vrot.lane.b32.xlu1 %v1162_v15, %s3563_s10 }
 0x4fe   : > { %v1387_v44 = vpop.xlane.xlu1 %1386 }
 0x4ff   : > { %3150 = vrcp.f32 %v1387_v44 }
 0x502   : > { %v1390_v45 = vpop.xlane.xlu1 %1389 }
 0x503   : > { %3152 = vrcp.f32 %v1390_v45 }
 0x506   : > { %v1620_v51 = vpop.permute.xlu1 %1619 }
 0x50c   : > { %v3151_v46 = vpop.eup %3150 }
 0x50d   : > { %v1393_v47 = vmul.f32 %v3151_v46, %v3147_v38 }
 0x50f   : > { %2827 = vmatmul.mubr.msk.f32.vlgmr.msra.gmra.mxu1 %vm1372_vm3, %v1393_v47 }
 0x510   : > { %v3153_v48 = vpop.eup %3152  ;;  %2830 = vmatpush3.msra.mxu1 %v4119_v20  ;;  %2831 = vmatprep.mubr.msk.f32.mxu1 %vm3562_vm1, %v3560_v2 }
 0x511   : > { %2834 = vmatprep.subr.mxu1 %v3560_v2  ;;  %v1394_v49 = vmul.f32 %v3153_v48, %v3149_v40 }
 0x513   : > { %2832 = vmatmul.mubr.msk.f32.vlgmr.msra.gmra.mxu1 %vm1372_vm3, %v1394_v49 }
 0x514   : > { %2835 = vmatpush3.xpose.msk.msra.mxu1 %vm1219_vm2, %v1544_v50  ;;  %2836 = vmatprep.mubr.msk.f32.mxu1 %vm3562_vm1, %v3560_v2 }
 0x515   : > { %2839 = vmatprep.subr.mxu1 %v3560_v2 }
 0x517   : > { %2837 = vmatmul.mubr.msk.f32.vlgmr.msra.gmra.mxu1 %vm1219_vm2, %v1542_v42 }
 0x518   : > { %2840 = vmatpush3.xpose.msk.msra.mxu1 %vm1219_vm2, %v1622_v43  ;;  %2841 = vmatprep.mubr.msk.f32.mxu1 %vm3562_vm1, %v3560_v2 }
 0x519   : > { %2844 = vmatprep.subr.mxu1 %v3560_v2 }
 0x51b   : > { %2842 = vmatmul.mubr.msk.f32.vlgmr.msra.gmra.mxu1 %vm1219_vm2, %v1620_v51 }
 0x51c   : > { %2846 = vmatprep.mubr.msk.f32.mxu1 %vm3562_vm1, %v3560_v2 }
 0x5cf   : > { %v4147_v52 = vpop.f32.mrf.mxu1 }
 0x5d1   : > { %v2828_v53 = vpop.f32.mrf.mxu1 }
 0x5d3   : > { %v4149_v54 = vpop.f32.mrf.mxu1 }
 0x5d5   : > { %v2833_v55 = vpop.f32.mrf.mxu1 }
 0x5d7   : > { %v1615_v58 = vpop.f32.mrf.mxu1 }
 0x5d8   : > { %v1616_v59 = vadd.f32 %v2683_v22, %v1615_v58  ;;  %v3122_v22 = vld [vmem:[%s3980_s1 + $0x38] sm:$0xff]  }
 0x5d9   : > { %v2838_v60 = vpop.f32.mrf.mxu1  ;;  %2855 = vmatpush3.bf16.msra.mxu0 %v3122_v22 }
 0x5da   : > { %v1697_v61 = vsel %vm1372_vm3, %v1616_v59, -inf  ;;  %2856 = vmatprep.subr.bf16.mxu0 %v3560_v2 }
 0x5db   : > { %1698 = vmax.xlane.f32.xlu0 %v1697_v61  ;;  %v1693_v62 = vpop.f32.mrf.mxu1 }
 0x5dc   : > { %v1694_v63 = vadd.f32 %v2684_v26, %v1693_v62  ;;  %v3126_v26 = vld [vmem:[%s3980_s1 + $0x18] sm:$0xff]  }
 0x5dd   : > { %v2843_v1 = vpop.f32.mrf.mxu1  ;;  %2857 = vmatpush3.bf16.msra.mxu0 %v3123_v23 }
 0x5de   : > { %v1700_v4 = vsel %vm1372_vm3, %v1694_v63, -inf  ;;  %2858 = vmatprep.subr.bf16.mxu0 %v3560_v2  ;;  %v3132_v1 = vld [vmem:[%s3986_s11 + $0x28] sm:$0xff]  }
 0x5df   : > { %1701 = vmax.xlane.f32.xlu1 %v1700_v4  ;;  %v3133_v4 = vld [vmem:[%s3986_s11 + $0x20] sm:$0xff]  }
 0x5e1   : > { %2859 = vmatpush3.bf16.msra.mxu0 %v3124_v24 }
 0x5e2   : > { %2860 = vmatprep.subr.bf16.mxu0 %v3560_v2 }
 0x5e5   : > { %2861 = vmatpush3.bf16.msra.mxu0 %v3125_v25 }
 0x5e6   : > { %2862 = vmatprep.subr.bf16.mxu0 %v3560_v2 }
 0x5e9   : > { %2863 = vmatpush3.bf16.msra.mxu0 %v3126_v26  ;;  %v3139_v26 = vld [vmem:[%s3992_s20 + $0x30] sm:$0xff]  }
 0x5ea   : > { %2864 = vmatprep.subr.bf16.mxu0 %v3560_v2 }
 0x5ed   : > { %2865 = vmatpush3.bf16.msra.mxu0 %v3127_v27  ;;  %v3140_v27 = vld [vmem:[%s3992_s20 + $0x28] sm:$0xff]  }
 0x5ee   : > { %2866 = vmatprep.subr.bf16.mxu0 %v3560_v2 }
 0x5f0   : > { %1797 = vrot.lane.b32.xlu1 %v4119_v20, %s3563_s10 }
 0x5f1   : > { %2867 = vmatpush3.bf16.msra.mxu0 %v3128_v28  ;;  %v3141_v28 = vld [vmem:[%s3992_s20 + $0x20] sm:$0xff]  }
 0x5f2   : > { %2868 = vmatprep.subr.bf16.mxu0 %v3560_v2 }
 0x5f5   : > { %2869 = vmatpush3.bf16.msra.mxu0 %v3129_v29  ;;  %v3142_v29 = vld [vmem:[%s3992_s20 + $0x18] sm:$0xff]  }
 0x5f6   : > { %2894 = vmatprep.subr.bf16.mxu0 %v3560_v2 }
 0x664   : > { %v1699_v5 = vpop.xlane.xlu0 %1698 }
 0x665   : > { %v1703_v6 = vsub.f32 %v1616_v59, %v1699_v5  ;;  %v3134_v5 = vld [vmem:[%s3986_s11 + $0x18] sm:$0xff]  }
 0x667   : > { %v1705_v7 = vmul.f32 1.442695, %v1703_v6  ;;  %v3135_v6 = vld [vmem:[%s3986_s11 + $0x10] sm:$0xff]  }
 0x668   : > { %v1702_v8 = vpop.xlane.xlu1 %1701 }
 0x669   : > { %3154 = vpow2.f32 %v1705_v7  ;;  %v1704_v9 = vsub.f32 %v1694_v63, %v1702_v8  ;;  %v3131_v63 = vld [vmem:[%s3986_s11 + $0x30] sm:$0xff]   ;;  %v3136_v7 = vld [vmem:[%s3986_s11 + $0x8] sm:$0xff]   ;;  %v3137_v8 = vld [vmem:[%s3986_s11] sm:$0xff]  }
 0x66b   : > { %v1707_v10 = vmul.f32 1.442695, %v1704_v9  ;;  %v3138_v9 = vld [vmem:[%s3992_s20 + $0x38] sm:$0xff]  }
 0x66c   : > { %v1798_v20 = vpop.permute.xlu1 %1797 }
 0x66d   : > { %3156 = vpow2.f32 %v1707_v10 }
 0x676   : > { %v3155_v11 = vpop.eup %3154 }
 0x677   : > { %v1709_v12 = vsel %vm1372_vm3, %v3155_v11, 0.0 }
 0x678   : > { %1710 = vadd.xlane.f32.xlu0 %v1709_v12 }
 0x67a   : > { %v3157_v13 = vpop.eup %3156 }
 0x67b   : > { %v1712_v0 = vsel %vm1372_vm3, %v3157_v13, 0.0 }
 0x67c   : > { %1713 = vadd.xlane.f32.xlu0 %v1712_v0 }
 0x692   : > { %1720 = vrot.lane.b32.xlu0 %v4113_v17, %s3563_s10 }
 0x701   : > { %v1711_v14 = vpop.xlane.xlu0 %1710 }
 0x702   : > { %3158 = vrcp.f32 %v1711_v14 }
 0x705   : > { %v1714_v15 = vpop.xlane.xlu0 %1713 }
 0x706   : > { %3160 = vrcp.f32 %v1714_v15 }
 0x709   : > { %v1721_v16 = vpop.permute.xlu0 %1720 }
 0x70a   : > { %2845 = vmatpush3.msra.mxu1 %v1721_v16 }
 0x70b   : > { %2849 = vmatprep.subr.mxu1 %v3560_v2 }
 0x70f   : > { %v3159_v18 = vpop.eup %3158 }
 0x710   : > { %v1717_v19 = vmul.f32 %v3159_v18, %v3155_v11  ;;  %v2709_v18 = vld [vmem:[%s4468_s22] ss:$0 sm:$0xff] }
 0x712   : > { %2847 = vmatmul.mubr.msk.f32.vlgmr.msra.gmra.mxu1 %vm1372_vm3, %v1717_v19 }
 0x713   : > { %v3161_v21 = vpop.eup %3160  ;;  %2850 = vmatpush3.msra.mxu1 %v1798_v20  ;;  %2851 = vmatprep.mubr.msk.f32.mxu1 %vm3562_vm1, %v3560_v2 }
 0x714   : > { %v1718_v17 = vmul.f32 %v3161_v21, %v3157_v13  ;;  %2874 = vmatprep.subr.bf16.mxu1 %v3560_v2 }
 0x716   : > { %2852 = vmatmul.mubr.msk.f32.vlgmr.msra.gmra.mxu1 %vm1372_vm3, %v1718_v17 }
 0x717   : > { %2890 = vmatprep.mubr.msk.bf16.mxu1 %vm3562_vm1, %v3560_v2 }
 0x7d2   : > { %v1792_v30 = vpop.f32.mrf.mxu1 }
 0x7d4   : > { %v2848_v31 = vpop.f32.mrf.mxu1 }
 0x7d5   : > { %v3144_v31 = vld [vmem:[%s3992_s20 + $0x8] sm:$0xff]  }
 0x7d6   : > { %v1869_v32 = vpop.f32.mrf.mxu1 }
 0x7d7   : > { %v3085_v33 = vpack.i.bf16 %v1869_v32, %v1792_v30  ;;  %v3143_v30 = vld [vmem:[%s3992_s20 + $0x10] sm:$0xff]   ;;  %v3145_v32 = vld [vmem:[%s3992_s20] sm:$0xff]  }
 0x7d8   : > { %v2853_v34 = vpop.f32.mrf.mxu1 }
 0x7d9   : > { %3086 = vrot.lane.b32.xlu1 %v3085_v33, %s3564_s26  ;;  %v2711_v33 = vld [vmem:[%s872_s7] ss:$0 sm:$0xff]  ;;  %s4476_s26 = sld [smem:[#allocation38_spill]] }
 0x7df   : > { %p4478_p1 = scmp.ne.s32.totalorder %s4476_s26, 0 }
 0x84b   : > { %v3087_v35 = vpop.permute.xlu1 %3086 }
 0x84c   : > { %v3089_v36 = vunpack.i.h.bf16 %v3087_v35  ;;  %v3088_v37 = vunpack.i.l.bf16 %v3087_v35 }
 0x84e   : > { %v1882_v38 = vsel %vm1219_vm2, %v4149_v54, %v3089_v36  ;;  %v1881_v39 = vsel %vm1219_vm2, %v4147_v52, %v3088_v37  ;;  %v3130_v52 = vld [vmem:[%s3986_s11 + $0x38] sm:$0xff]   ;;  %s4469_s11 = sld [smem:[#allocation52_spill]] }
 0x84f   : > { %v2707_v40 = vpack.c.bf16 %v1882_v38, %v1881_v39  ;;  %2875 = vmatpush3.bf16.msra.mxu1 %v3130_v52 }
 0x850   : > { %2876 = vmatprep.subr.bf16.mxu1 %v3560_v2 }
 0x851   : > { %2871 = vmatmul.mubr.msk.bf16.vlgmr.msra.gmra.mxu0 %vm2706_vm5, %v2707_v40 }
 0x852   : > { %2910 = vmatprep.mubr.msk.bf16.mxu0 %vm3562_vm1, %v3560_v2  ;;  %2895 = vmatpush3.bf16.msra.mxu0 %v3138_v9 }
 0x853   : > { %2877 = vmatpush3.bf16.msra.mxu1 %v3131_v63  ;;  %2896 = vmatprep.subr.bf16.mxu0 %v3560_v2 }
 0x854   : > { %2878 = vmatprep.subr.bf16.mxu1 %v3560_v2  ;;  %s4470_s15 = scalar_lea.vmem %s4469_s11, %s4000_s8  ;;  %s3394_s8 = scalar_lea.vmem %s4272_s30, 256 }
 0x855   : > { %v2710_v17 = vld [vmem:[%s4470_s15] ss:$0 sm:$0xff]  ;;  %p3395_p3 = scmp.ne.s32.totalorder %s4272_s30, %s3394_s8 }
 0x856   : > { %2897 = vmatpush3.bf16.msra.mxu0 %v3139_v26 }
 0x857   : > { %2879 = vmatpush3.bf16.msra.mxu1 %v3132_v1  ;;  %2898 = vmatprep.subr.bf16.mxu0 %v3560_v2  ;;  %p3396_p11 = pnand %p3395_p3, %p4478_p1 }
 0x858   : > { %2880 = vmatprep.subr.bf16.mxu1 %v3560_v2 }
 0x859   : > { %p3397_p9 = pneg %p3396_p11 }
 0x85a   : > { %2899 = vmatpush3.bf16.msra.mxu0 %v3140_v27 }
 0x85b   : > { %2881 = vmatpush3.bf16.msra.mxu1 %v3133_v4  ;;  %2900 = vmatprep.subr.bf16.mxu0 %v3560_v2 }
 0x85c   : > { %2882 = vmatprep.subr.bf16.mxu1 %v3560_v2 }
 0x85e   : > { %2901 = vmatpush3.bf16.msra.mxu0 %v3141_v28 }
 0x85f   : > { %2883 = vmatpush3.bf16.msra.mxu1 %v3134_v5  ;;  %2902 = vmatprep.subr.bf16.mxu0 %v3560_v2 }
 0x860   : > { %2884 = vmatprep.subr.bf16.mxu1 %v3560_v2 }
 0x862   : > { %2903 = vmatpush3.bf16.msra.mxu0 %v3142_v29 }
 0x863   : > { %2885 = vmatpush3.bf16.msra.mxu1 %v3135_v6  ;;  %2904 = vmatprep.subr.bf16.mxu0 %v3560_v2 }
 0x864   : > { %2886 = vmatprep.subr.bf16.mxu1 %v3560_v2 }
 0x866   : > { %2905 = vmatpush3.bf16.msra.mxu0 %v3143_v30 }
 0x867   : > { %2887 = vmatpush3.bf16.msra.mxu1 %v3136_v7  ;;  %2906 = vmatprep.subr.bf16.mxu0 %v3560_v2 }
 0x868   : > { %2888 = vmatprep.subr.bf16.mxu1 %v3560_v2 }
 0x86a   : > { %2907 = vmatpush3.bf16.msra.mxu0 %v3144_v31 }
 0x86b   : > { %2889 = vmatpush3.bf16.msra.mxu1 %v3137_v8  ;;  %2908 = vmatprep.subr.bf16.mxu0 %v3560_v2 }
 0x86e   : > { %2909 = vmatpush3.bf16.msra.mxu0 %v3145_v32 }
 0x911   : > { %v1992_v42 = vpop.f32.mrf.mxu0 }
 0x912   : > { %v1993_v43 = vadd.f32 %v2697_v41, %v1992_v42 }
 0x913   : > { %v2872_v44 = vpop.f32.mrf.mxu0 }
 0x914   : > { %v1999_v45 = vadd.f32 %v1993_v43, %v4081_v56 }
 0x915   : > { %v1995_v46 = vpop.f32.mrf.mxu0 }
 0x916   : > { %v1996_v47 = vadd.f32 %v2697_v41, %v1995_v46  ;;  %v2003_v48 = vmul.f32 %v4017_v3, %v1999_v45 }
 0x917   : > { %v2873_v49 = vpop.f32.mrf.mxu0 }
 0x918   : > { %v2000_v50 = vadd.f32 %v1996_v47, %v4084_v57  ;;  %2005 = vadd.xlane.f32.xlu1 %v2003_v48 }
 0x91a   : > { %v2004_v51 = vmul.f32 %v4017_v3, %v2000_v50 }
 0x91c   : > { %2007 = vadd.xlane.f32.xlu0 %v2004_v51 }
 0x9a1   : > { %v2006_v53 = vpop.xlane.xlu1 %2005 }
 0x9a2   : > { %v2009_v54 = vmul.f32 0.03125, %v2006_v53 }
 0x9a4   : > { %v2011_v56 = vsub.f32 %v1999_v45, %v2009_v54 }
 0x9a5   : > { %v2008_v55 = vpop.xlane.xlu0 %2007 }
 0x9a6   : > { %v2010_v58 = vmul.f32 0.03125, %v2008_v55  ;;  %v2013_v59 = vmul.f32 %v4017_v3, %v2011_v56 }
 0x9a8   : > { %v2012_v57 = vsub.f32 %v2000_v50, %v2010_v58  ;;  %v2015_v60 = vmul.f32 %v2013_v59, %v2013_v59  ;;  %v2720_v50 = vld [vmem:[%s875_s2] ss:$0 sm:$0xff] }
 0x9aa   : > { %2017 = vadd.xlane.f32.xlu0 %v2015_v60  ;;  %v2014_v61 = vmul.f32 %v4017_v3, %v2012_v57 }
 0x9ac   : > { %v2016_v62 = vmul.f32 %v2014_v61, %v2014_v61 }
 0x9ae   : > { %2019 = vadd.xlane.f32.xlu0 %v2016_v62 }
 0xa33   : > { %v2018_v10 = vpop.xlane.xlu0 %2017 }
 0xa34   : > { %v2021_v11 = vmul.f32 0.03125, %v2018_v10 }
 0xa36   : > { %v2023_v12 = vadd.f32 1e-12, %v2021_v11 }
 0xa37   : > { %v2020_v13 = vpop.xlane.xlu0 %2019 }
 0xa38   : > { %3162 = vrsqrt.f32 %v2023_v12  ;;  %v2022_v0 = vmul.f32 0.03125, %v2020_v13 }
 0xa3a   : > { %v2024_v14 = vadd.f32 1e-12, %v2022_v0 }
 0xa3c   : > { %3164 = vrsqrt.f32 %v2024_v14 }
 0xa45   : > { %v3163_v15 = vpop.eup %3162 }
 0xa46   : > { %v2027_v16 = vmul.f32 %v3163_v15, %v2011_v56 }
 0xa48   : > { %v2035_v21 = vmul.f32 %v2709_v18, %v2027_v16 }
 0xa49   : > { %v3165_v19 = vpop.eup %3164 }
 0xa4a   : > { %v2028_v20 = vmul.f32 %v3165_v19, %v2012_v57  ;;  %v2043_v23 = vadd.f32 %v2710_v17, %v2035_v21 }
 0xa4c   : > { %v2036_v22 = vmul.f32 %v2709_v18, %v2028_v20  ;;  %v2730_v18 = vld [vmem:[%s881_s23] ss:$0 sm:$0xff]  ;;  %s2330_s23 = scalar_lea.sflag [#allocation4], %s3947_s28 }
 0xa4e   : > { %v2044_v24 = vadd.f32 %v2710_v17, %v2036_v22 }
 0xa50   : > { %v2061_v25 = vpack.c.bf16 %v2044_v24, %v2043_v23 }
 0xa52   : > { %2891 = vmatmul.mubr.bf16.vlgmr.msra.gmra.mxu1 %v2061_v25 }
 0xb12   : > { %v2151_v34 = vpop.f32.mrf.mxu1 }
 0xb13   : > { %v2152_v35 = vadd.f32 %v2711_v33, %v2151_v34 }
 0xb14   : > { %v2892_v36 = vpop.f32.mrf.mxu1 }
 0xb15   : > { %v2160_v37 = vmul.f32 0.70710677, %v2152_v35  ;;  %v2158_v44 = vmul.f32 0.5, %v2152_v35 }
 0xb16   : > { %v2154_v38 = vpop.f32.mrf.mxu1 }
 0xb17   : > { %3166 = verf.f32 %v2160_v37  ;;  %v2155_v39 = vadd.f32 %v2711_v33, %v2154_v38 }
 0xb18   : > { %v2893_v40 = vpop.f32.mrf.mxu1 }
 0xb19   : > { %v2161_v41 = vmul.f32 0.70710677, %v2155_v39  ;;  %v2159_v45 = vmul.f32 0.5, %v2155_v39 }
 0xb1b   : > { %3168 = verf.f32 %v2161_v41 }
 0xb24   : > { %v3167_v42 = vpop.eup %3166 }
 0xb25   : > { %v2164_v2 = vadd.f32 1.0, %v3167_v42 }
 0xb27   : > { %v2166_v47 = vmul.f32 %v2164_v2, %v2158_v44 }
 0xb28   : > { %v3169_v43 = vpop.eup %3168 }
 0xb29   : > { %v2165_v46 = vadd.f32 1.0, %v3169_v43 }
 0xb2b   : > { %v2167_v48 = vmul.f32 %v2165_v46, %v2159_v45 }
 0xb2d   : > { %v2184_v49 = vpack.c.bf16 %v2167_v48, %v2166_v47 }
 0xb2f   : > { %2911 = vmatmul.mubr.bf16.vlgmr.msra.gmra.mxu0 %v2184_v49 }
 0xbef   : > { %v2274_v51 = vpop.f32.mrf.mxu0 }
 0xbf0   : > { %v2275_v52 = vadd.f32 %v2720_v50, %v2274_v51 }
 0xbf1   : > { %v2912_v53 = vpop.f32.mrf.mxu0 }
 0xbf2   : > { %v2281_v54 = vadd.f32 %v2275_v52, %v2043_v23 }
 0xbf3   : > { %v2277_v56 = vpop.f32.mrf.mxu0 }
 0xbf4   : > { %v2278_v55 = vadd.f32 %v2720_v50, %v2277_v56  ;;  %v2285_v58 = vmul.f32 %v4017_v3, %v2281_v54 }
 0xbf5   : > { %v2913_v59 = vpop.f32.mrf.mxu0 }
 0xbf6   : > { %v2282_v57 = vadd.f32 %v2278_v55, %v2044_v24  ;;  %2287 = vadd.xlane.f32.xlu1 %v2285_v58 }
 0xbf8   : > { %v2286_v60 = vmul.f32 %v4017_v3, %v2282_v57 }
 0xbfa   : > { %2289 = vadd.xlane.f32.xlu0 %v2286_v60 }
 0xc7f   : > { %v2288_v61 = vpop.xlane.xlu1 %2287 }
 0xc80   : > { %v2291_v62 = vmul.f32 0.03125, %v2288_v61 }
 0xc82   : > { %v2293_v63 = vsub.f32 %v2281_v54, %v2291_v62 }
 0xc83   : > { %v2290_v1 = vpop.xlane.xlu0 %2289 }
 0xc84   : > { %v2292_v4 = vmul.f32 0.03125, %v2290_v1  ;;  %v2295_v5 = vmul.f32 %v4017_v3, %v2293_v63 }
 0xc86   : > { %v2294_v6 = vsub.f32 %v2282_v57, %v2292_v4  ;;  %v2297_v7 = vmul.f32 %v2295_v5, %v2295_v5 }
 0xc88   : > { %2299 = vadd.xlane.f32.xlu1 %v2297_v7  ;;  %v2296_v8 = vmul.f32 %v4017_v3, %v2294_v6  ;;  %v2729_v3 = vld [vmem:[%s878_s18] ss:$0 sm:$0xff]  ;;  %s3565_s18 = smov [#allocation14]  }
 0xc89   : > { %s3398_s14 = sshll.u32 %s3565_s18, 4  ;;  %s3399_s14 = int_to_ptr.vmem [resolvable:$false] %s3398_s14 }
 0xc8a   : > { %v2298_v9 = vmul.f32 %v2296_v8, %v2296_v8  ;;  %s3400_s22 = scalar_lea.vmem %s3399_s14, 512  ;;  %p3401_p10 = scmp.lt.s32.totalorder %s4272_s30, %s3399_s14 }
 0xc8b   : > { %p3402_p6 = scmp.lt.s32.totalorder %s3400_s22, %s3394_s8 }
 0xc8c   : > { %2301 = vadd.xlane.f32.xlu0 %v2298_v9 }
 0xc8d   : > { %p3403_p2 = por %p3402_p6, %p3401_p10 }
 0xc8f   : > { %p3404_p12 = pnand %p3403_p2, %p3397_p9 }
 0xd11   : > { %v2300_v10 = vpop.xlane.xlu1 %2299 }
 0xd12   : > { %v2303_v11 = vmul.f32 0.03125, %v2300_v10 }
 0xd14   : > { %v2305_v12 = vadd.f32 1e-12, %v2303_v11 }
 0xd15   : > { %v2302_v13 = vpop.xlane.xlu0 %2301 }
 0xd16   : > { %3170 = vrsqrt.f32 %v2305_v12  ;;  %v2304_v0 = vmul.f32 0.03125, %v2302_v13 }
 0xd18   : > { %v2306_v14 = vadd.f32 1e-12, %v2304_v0 }
 0xd1a   : > { %3172 = vrsqrt.f32 %v2306_v14 }
 0xd23   : > { %v3171_v15 = vpop.eup %3170 }
 0xd24   : > { %v2309_v16 = vmul.f32 %v3171_v15, %v2293_v63 }
 0xd26   : > { %v2317_v19 = vmul.f32 %v2729_v3, %v2309_v16 }
 0xd27   : > { %v3173_v20 = vpop.eup %3172 }
 0xd28   : > { %v2310_v21 = vmul.f32 %v3173_v20, %v2294_v6  ;;  %v2325_v17 = vadd.f32 %v2730_v18, %v2317_v19 }
 0xd2a   : > { %v2318_v22 = vmul.f32 %v2729_v3, %v2310_v21  ;;  %2327 = vst [vmem:[%s4042_s12] sm:$0xff] %v2325_v17 }
 0xd2c   : > { %v2326_v23 = vadd.f32 %v2730_v18, %v2318_v22 }
 0xd2e   : > { %2328 = vst [vmem:[%s4042_s12 + $0x8] sm:$0xff] %v2326_v23 }
 0xd2f   : > { %3407 = shalt.err (!%p3404_p12)
}
 0xd30   : > { %s3408_s12 = scalar_lea.hbm %s4270_s16, 256  ;;  %s3412_s11 = scalar_lea.hbm %s4477_s13, 512 }
 0xd31   : > { %p3409_p13 = scmp.ne.s32.totalorder %s4270_s16, %s3408_s12  ;;  %p3413_p4 = scmp.lt.s32.totalorder %s4270_s16, %s4477_s13 }
 0xd32   : > { %p3414_p5 = scmp.lt.s32.totalorder %s3412_s11, %s3408_s12 }
 0xd33   : > { %p3410_p0 = pnand %p3409_p13, %p4478_p1 }
 0xd34   : > { %p3415_p8 = por %p3414_p5, %p3413_p4 }
 0xd35   : > { %p3411_p7 = pneg %p3410_p0 }
 0xd37   : > { %p3416_p3 = pnand %p3415_p8, %p3411_p7 }
 0xd39   : > { %3419 = shalt.err (!%p3416_p3)
}
 0xd3a   : > { %s3566_s4 = smov 128   ;;  %s3567_s27 = smov 8  }
 0xd3b   : > { %2938 = dma.vmem_to_hbm [thread:$0]  (%p4478_p1), %s4272_s30, 256, %s4270_s16, %s2330_s23, %s3566_s4, %s3566_s4, %s3567_s27  }
 0xd3c PF: > { %s4479_s20 = sld [smem:[#allocation33_spill]] }
 0xd3d   : > { %s4480_s7 = sld [smem:[#allocation26_spill]] }
 0xd3e   : > { %s4481_s24 = sld [smem:[#allocation37_spill]] }
 0xd42   : > { %p2975_p11 = scmp.ge.s32.totalorder %s4479_s20, 2 }
 0xd43   : > { %s2358_s17 = sand.u32 1, %s4480_s7  }
 0xd44   : > { %p4482_p9 = scmp.ne.s32.totalorder %s4481_s24, 0  ;;  %s2359_s19 = scalar_lea.sflag [#allocation4], %s2358_s17 }
 0xd46   : > { %p2967_p10 = pnand %p2975_p11, %p4482_p9 }
 0xd48   : > { %p2968_p6 = pneg %p2967_p10 }
 0xd4a   : > { %3497 = dma.done.wait (%p2968_p6), %s2359_s19, 256  }
 0xd4b   : > { %3499 = vsyncadd (%p2968_p6), %s2359_s19, 4294967040  ;;  %s36_s0 = sadd.s32 1, %s4479_s20   ;;  %s4483_s21 = sld [smem:[#allocation24_spill]] }
 0xd4c   : > { %p33_p2 = scmp.ge.s32.totalorder %s36_s0, 6   ;;  %s4484_s22 = sld [smem:[#allocation25_spill]] }
 0xd4d   : > { %s4485_s23 = sld [smem:[#allocation41_spill]] }
 0xd4e   : > { %s4486_s24 = sld [smem:[#allocation27_spill]] }
 0xd4f   : > { %s4487_s25 = sld [smem:[#allocation28_spill]] }
 0xd50   : > { %s4488_s26 = sld [smem:[#allocation42_spill]]  ;;  %35 = sbr.rel (!%p33_p2) target bundleno = 30 (0x1e), region = 222 }
 0xd51   : > { %s4489_s27 = sld [smem:[#allocation31_spill]] }
 0xd52   : > { %s4490_s28 = sld [smem:[#allocation32_spill]] }
 0xd53   : > { %s4491_s29 = sld [smem:[#allocation39_spill]] }
 0xd54   : > { %s4492_s30 = sld [smem:[#allocation40_spill]] }
 0xd55   :  { %2364 = vsyncpa [#allocation3], 1 }
 0xd56   :  { %2366 = vsyncpa [#allocation3 + $0x1], 1 }
 0xd57   :  { %2367 = vsyncpa [#allocation6], 1 }
 0xd58   :  { %2369 = vsyncpa [#allocation6 + $0x1], 1 }
 0xd59   :  { %2370 = vsyncpa [#allocation9], 1 }
 0xd5a   :  { %2371 = vsyncpa [#allocation4], 1 }
 0xd5b   :  { %2373 = vsyncpa [#allocation4 + $0x1], 1 }

</bundles_post_ra>
